<compile_context>
chip_gen: v6e
topology: v6e:2x2x1
jax: 0.10.0
libtpu: 0.0.40
codegen_flags: <defaults>
</compile_context>

<pallas_src>
import functools

import jax
import jax.numpy as jnp
from jax.experimental import pallas as pl
from jax.experimental.pallas import tpu as pltpu


def _layernorm(x, w, b, eps=1e-5):
    mu = jnp.mean(x, axis=-1, keepdims=True)
    var = jnp.mean((x - mu) ** 2, axis=-1, keepdims=True)
    return (x - mu) * jax.lax.rsqrt(var + eps) * w + b


def transformer_block_kernel(
    mask_ref, q_ref, k_ref, v_ref,
    wq_ref, wk_ref, wv_ref, wo_ref,
    w1_ref, b1_ref, w2_ref,
    vecs_ref,
    out_ref,
    ctx_scratch,
    *, heads, head_dim, embed_size,
):
    B, S, E = q_ref.shape          # one batch *tile* per grid step
    rows = B * S

    # Flatten to (rows, E) — leading-dim merge only, no relayout.
    q = q_ref[...].reshape(rows, E)
    k = k_ref[...].reshape(rows, E)
    v = v_ref[...].reshape(rows, E)

    # Head-batched projections via block-diagonal (E,E) weights:
    # one big MXU matmul each instead of H tiny (S,D)@(D,D) matmuls.
    qp = jnp.dot(q, wq_ref[...], preferred_element_type=jnp.float32)
    kp = jnp.dot(k, wk_ref[...], preferred_element_type=jnp.float32)
    vp = jnp.dot(v, wv_ref[...], preferred_element_type=jnp.float32)

    # Hoisted out of the head loop.
    mask_zero = mask_ref[...] == 0.0                       # (B, S, S) bool
    inv_scale = jnp.float32(1.0 / (embed_size ** 0.5))
    neg_big = jnp.float32(-1e20)

    # Per-head attention, batched over the B batch elements in this tile.
    # TODO(synk): for long sequences, replace the full (S,S) scores with a
    # flash-style online-softmax tiling over key blocks (v7x VMEM).
    for h in range(heads):
        sl = slice(h * head_dim, (h + 1) * head_dim)
        qh = qp[:, sl].reshape(B, S, head_dim)
        kh = kp[:, sl].reshape(B, S, head_dim)
        vh = vp[:, sl].reshape(B, S, head_dim)

        # energy: (B, S_q, S_k); masked_fill happens BEFORE the 1/sqrt(E)
        # scaling, matching the PyTorch reference exactly.
        ene = jnp.einsum('bqd,bkd->bqk', qh, kh,
                         preferred_element_type=jnp.float32)
        ene = jnp.where(mask_zero, neg_big, ene)
        scores = ene * inv_scale

        m = jnp.max(scores, axis=-1, keepdims=True)
        p = jnp.exp(scores - m)
        denom = jnp.sum(p, axis=-1, keepdims=True)
        attn = p * pl.reciprocal(denom, approx=True)       # EUP, not VPU divide

        ctx_h = jnp.einsum('bqk,bkd->bqd', attn, vh,
                           preferred_element_type=jnp.float32)
        # Write the head slice straight into the VMEM slab: no concatenate.
        ctx_scratch[:, sl] = ctx_h.reshape(rows, head_dim)

    # Packed small parameters (one (8, E) array):
    bo   = vecs_ref[0:1, :]
    ln1w = vecs_ref[1:2, :]
    ln1b = vecs_ref[2:3, :]
    b2   = vecs_ref[3:4, :]
    ln2w = vecs_ref[4:5, :]
    ln2b = vecs_ref[5:6, :]

    # Output projection: single (rows, E) @ (E, E).
    attn_out = jnp.dot(ctx_scratch[...], wo_ref[...],
                       preferred_element_type=jnp.float32) + bo

    # residual + norm1 (dropout == identity at eval)
    x = _layernorm(attn_out + q, ln1w, ln1b)

    # feed forward: Linear -> ReLU -> Linear, on (rows, E/F) tiles
    h1 = jnp.maximum(
        jnp.dot(x, w1_ref[...], preferred_element_type=jnp.float32)
        + b1_ref[...], 0.0)
    ff = jnp.dot(h1, w2_ref[...], preferred_element_type=jnp.float32) + b2

    # residual + norm2 (dropout == identity at eval)
    out_ref[...] = _layernorm(ff + x, ln2w, ln2b).reshape(B, S, E)


def _pick_batch_tile(N, S, target_rows=128):
    """Largest divisor of N whose tile has ~target_rows rows (amortizes the
    ~0.35us per-grid-step overhead)."""
    bt = max(1, min(N, max(1, target_rows // max(S, 1))))
    while N % bt:
        bt -= 1
    return bt


def transformer_block(value, key, query, mask, params, *, heads):
    N, S, E = query.shape
    D = E // heads
    F = params["w1"].shape[1]  # forward_expansion * E
    dtype = jnp.float32

    # --- host-side weight prep (done once, outside the kernel) -------------
    eye_h = jnp.eye(heads, dtype=dtype)
    wq_blk = jnp.kron(eye_h, params["wq"].astype(dtype))   # (E, E) block-diag
    wk_blk = jnp.kron(eye_h, params["wk"].astype(dtype))
    wv_blk = jnp.kron(eye_h, params["wv"].astype(dtype))

    # Pack the six (1, E) vectors into a single (8, E) array (fewer DMAs /
    # pipeline buffers). Rows: bo, ln1_w, ln1_b, b2, ln2_w, ln2_b, pad, pad.
    vecs = jnp.concatenate(
        [params["bo"], params["ln1_w"], params["ln1_b"],
         params["b2"], params["ln2_w"], params["ln2_b"],
         jnp.zeros((2, E), dtype)], axis=0).astype(dtype)

    B_TILE = _pick_batch_tile(N, S)
    grid = (N // B_TILE,)

    kern = functools.partial(
        transformer_block_kernel, heads=heads, head_dim=D, embed_size=E)

    act_spec = pl.BlockSpec((B_TILE, S, E), lambda n: (n, 0, 0))
    mask_spec = pl.BlockSpec((B_TILE, S, S), lambda n: (n, 0, 0))

    def const2d(shape):
        return pl.BlockSpec(shape, lambda n: (0, 0))

    in_specs = [
        mask_spec, act_spec, act_spec, act_spec,
        const2d((E, E)), const2d((E, E)), const2d((E, E)),   # wq/wk/wv block-diag
        const2d((E, E)),                                      # wo (pre-T)
        const2d((E, F)), const2d((1, F)), const2d((F, E)),    # w1, b1, w2
        const2d((8, E)),                                       # packed vecs
    ]

    return pl.pallas_call(
        kern,
        out_shape=jax.ShapeDtypeStruct((N, S, E), dtype),
        grid_spec=pltpu.PrefetchScalarGridSpec(
            num_scalar_prefetch=0,
            grid=grid,
            in_specs=in_specs,
            out_specs=act_spec,
            scratch_shapes=[pltpu.VMEM((B_TILE * S, E), jnp.float32)],
        ),
        compiler_params=pltpu.CompilerParams(
            dimension_semantics=("parallel",)),
    )(
        mask, query, key, value,
        wq_blk, wk_blk, wv_blk,
        params["wo"],
        params["w1"], params["b1"], params["w2"],
        vecs,
    )


def reference_jax(value, key, query, mask, p, *, heads):
    """Pure-JAX re-implementation of the PyTorch forward, for verification."""
    N, S, E = query.shape
    D = E // heads
    v = value.reshape(N, S, heads, D) @ p["wv"]
    k = key.reshape(N, S, heads, D) @ p["wk"]
    q = query.reshape(N, S, heads, D) @ p["wq"]
    ene = jnp.einsum("nqhd,nkhd->nhqk", q, k)
    ene = jnp.where(mask[:, None, :, :] == 0.0, -1e20, ene)
    attn = jax.nn.softmax(ene / (E ** 0.5), axis=3)
    out = jnp.einsum("nhql,nlhd->nqhd", attn, v).reshape(N, S, E)
    out = out @ p["wo"] + p["bo"][0]

    def ln(x, w, b):
        mu = x.mean(-1, keepdims=True)
        var = ((x - mu) ** 2).mean(-1, keepdims=True)
        return (x - mu) / jnp.sqrt(var + 1e-5) * w + b

    x = ln(out + query, p["ln1_w"][0], p["ln1_b"][0])
    ff = jnp.maximum(x @ p["w1"] + p["b1"][0], 0.0) @ p["w2"] + p["b2"][0]
    return ln(ff + x, p["ln2_w"][0], p["ln2_b"][0])


if __name__ == "__main__":
    # Small shapes consistent with the module.
    N, S, E, H, FEXP = 2, 8, 32, 4, 2
    D = E // H
    F = FEXP * E

    root = jax.random.PRNGKey(0)
    ks = jax.random.split(root, 16)

    def init(key, shape, scale=0.1):
        return (scale * jax.random.normal(key, shape)).astype(jnp.float32)

    params = {
        # per-head projections (stored as (in, out) == PyTorch W.T)
        "wq": init(ks[0], (D, D)),
        "wk": init(ks[1], (D, D)),
        "wv": init(ks[2], (D, D)),
        # fc_out
        "wo": init(ks[3], (E, E)),
        "bo": init(ks[4], (1, E)),
        # layernorms
        "ln1_w": jnp.ones((1, E), jnp.float32),
        "ln1_b": jnp.zeros((1, E), jnp.float32),
        "ln2_w": jnp.ones((1, E), jnp.float32),
        "ln2_b": jnp.zeros((1, E), jnp.float32),
        # feed-forward
        "w1": init(ks[5], (E, F)),
        "b1": init(ks[6], (1, F)),
        "w2": init(ks[7], (F, E)),
        "b2": init(ks[8], (1, E)),
    }

    value = init(ks[9], (N, S, E), scale=1.0)
    key_in = init(ks[10], (N, S, E), scale=1.0)
    query = init(ks[11], (N, S, E), scale=1.0)
    # causal mask, broadcast over heads: (N, S, S), 1.0 = keep, 0.0 = masked
    mask = jnp.broadcast_to(
        jnp.tril(jnp.ones((S, S), jnp.float32)), (N, S, S))

    out = transformer_block(value, key_in, query, mask, params, heads=H)
    out = jax.block_until_ready(out)

    ref = reference_jax(value, key_in, query, mask, params, heads=H)
    assert out.shape == (N, S, E)
    assert jnp.allclose(out, ref, atol=1e-2, rtol=1e-2), "mismatch vs reference"

    print("KERNEL_OK")
</pallas_src>

<mosaic_0001>
module attributes {stable_mosaic.version = 11 : i64} {
  func.func @transformer_block_kernel(%arg0: i32, %arg1: memref<2x8x8xf32, #tpu.memory_space<vmem>>, %arg2: memref<2x8x32xf32, #tpu.memory_space<vmem>>, %arg3: memref<2x8x32xf32, #tpu.memory_space<vmem>>, %arg4: memref<2x8x32xf32, #tpu.memory_space<vmem>>, %arg5: memref<32x32xf32, #tpu.memory_space<vmem>>, %arg6: memref<32x32xf32, #tpu.memory_space<vmem>>, %arg7: memref<32x32xf32, #tpu.memory_space<vmem>>, %arg8: memref<32x32xf32, #tpu.memory_space<vmem>>, %arg9: memref<32x64xf32, #tpu.memory_space<vmem>>, %arg10: memref<1x64xf32, #tpu.memory_space<vmem>>, %arg11: memref<64x32xf32, #tpu.memory_space<vmem>>, %arg12: memref<8x32xf32, #tpu.memory_space<vmem>>, %arg13: memref<2x8x32xf32, #tpu.memory_space<vmem>>, %arg14: memref<16x32xf32, #tpu.memory_space<vmem>>) attributes {dimension_semantics = [#tpu.dimension_semantics<parallel>], iteration_bounds = array<i64: 1>, scalar_prefetch = 0 : i64, scratch_operands = 1 : i64, tpu.core_type = #tpu.core_type<tc>, window_params = [{transform_indices = @transform_0, window_bounds = array<i64: 2, 8, 8>}, {transform_indices = @transform_1, window_bounds = array<i64: 2, 8, 32>}, {transform_indices = @transform_2, window_bounds = array<i64: 2, 8, 32>}, {transform_indices = @transform_3, window_bounds = array<i64: 2, 8, 32>}, {pipeline_mode = #tpu.pipeline_mode<synchronous>, transform_indices = @transform_4, window_bounds = array<i64: 32, 32>}, {pipeline_mode = #tpu.pipeline_mode<synchronous>, transform_indices = @transform_5, window_bounds = array<i64: 32, 32>}, {pipeline_mode = #tpu.pipeline_mode<synchronous>, transform_indices = @transform_6, window_bounds = array<i64: 32, 32>}, {pipeline_mode = #tpu.pipeline_mode<synchronous>, transform_indices = @transform_7, window_bounds = array<i64: 32, 32>}, {pipeline_mode = #tpu.pipeline_mode<synchronous>, transform_indices = @transform_8, window_bounds = array<i64: 32, 64>}, {pipeline_mode = #tpu.pipeline_mode<synchronous>, transform_indices = @transform_9, window_bounds = array<i64: 1, 64>}, {pipeline_mode = #tpu.pipeline_mode<synchronous>, transform_indices = @transform_10, window_bounds = array<i64: 64, 32>}, {pipeline_mode = #tpu.pipeline_mode<synchronous>, transform_indices = @transform_11, window_bounds = array<i64: 8, 32>}, {transform_indices = @transform_12, window_bounds = array<i64: 2, 8, 32>}]} {
    %c0 = arith.constant 0 : index
    %c0_0 = arith.constant 0 : index
    %c0_1 = arith.constant 0 : index
    %0 = vector.load %arg2[%c0, %c0_0, %c0_1] : memref<2x8x32xf32, #tpu.memory_space<vmem>>, vector<2x8x32xf32>
    %1 = vector.shape_cast %0 : vector<2x8x32xf32> to vector<16x32xf32>
    %c0_2 = arith.constant 0 : index
    %c0_3 = arith.constant 0 : index
    %c0_4 = arith.constant 0 : index
    %2 = vector.load %arg3[%c0_2, %c0_3, %c0_4] : memref<2x8x32xf32, #tpu.memory_space<vmem>>, vector<2x8x32xf32>
    %3 = vector.shape_cast %2 : vector<2x8x32xf32> to vector<16x32xf32>
    %c0_5 = arith.constant 0 : index
    %c0_6 = arith.constant 0 : index
    %c0_7 = arith.constant 0 : index
    %4 = vector.load %arg4[%c0_5, %c0_6, %c0_7] : memref<2x8x32xf32, #tpu.memory_space<vmem>>, vector<2x8x32xf32>
    %5 = vector.shape_cast %4 : vector<2x8x32xf32> to vector<16x32xf32>
    %c0_8 = arith.constant 0 : index
    %c0_9 = arith.constant 0 : index
    %6 = vector.load %arg5[%c0_8, %c0_9] : memref<32x32xf32, #tpu.memory_space<vmem>>, vector<32x32xf32>
    %cst = arith.constant dense<0.000000e+00> : vector<16x32xf32>
    %7 = tpu.matmul %1, %6, %cst {dimension_numbers = #tpu.dot_dimension_numbers<[1], [0], [0], [1], [0, 0, 1, 1], [], []>} : vector<16x32xf32>, vector<32x32xf32>, vector<16x32xf32> -> vector<16x32xf32>
    %c0_10 = arith.constant 0 : index
    %c0_11 = arith.constant 0 : index
    %8 = vector.load %arg6[%c0_10, %c0_11] : memref<32x32xf32, #tpu.memory_space<vmem>>, vector<32x32xf32>
    %cst_12 = arith.constant dense<0.000000e+00> : vector<16x32xf32>
    %9 = tpu.matmul %3, %8, %cst_12 {dimension_numbers = #tpu.dot_dimension_numbers<[1], [0], [0], [1], [0, 0, 1, 1], [], []>} : vector<16x32xf32>, vector<32x32xf32>, vector<16x32xf32> -> vector<16x32xf32>
    %c0_13 = arith.constant 0 : index
    %c0_14 = arith.constant 0 : index
    %10 = vector.load %arg7[%c0_13, %c0_14] : memref<32x32xf32, #tpu.memory_space<vmem>>, vector<32x32xf32>
    %cst_15 = arith.constant dense<0.000000e+00> : vector<16x32xf32>
    %11 = tpu.matmul %5, %10, %cst_15 {dimension_numbers = #tpu.dot_dimension_numbers<[1], [0], [0], [1], [0, 0, 1, 1], [], []>} : vector<16x32xf32>, vector<32x32xf32>, vector<16x32xf32> -> vector<16x32xf32>
    %c0_16 = arith.constant 0 : index
    %c0_17 = arith.constant 0 : index
    %c0_18 = arith.constant 0 : index
    %12 = vector.load %arg1[%c0_16, %c0_17, %c0_18] : memref<2x8x8xf32, #tpu.memory_space<vmem>>, vector<2x8x8xf32>
    %cst_19 = arith.constant 0.000000e+00 : f32
    %13 = vector.broadcast %cst_19 : f32 to vector<2x8x8xf32>
    %14 = arith.cmpf oeq, %12, %13 : vector<2x8x8xf32>
    %15 = vector.extract_strided_slice %7 {offsets = [0, 0], sizes = [16, 8], strides = [1, 1]} : vector<16x32xf32> to vector<16x8xf32>
    %16 = vector.shape_cast %15 : vector<16x8xf32> to vector<2x8x8xf32>
    %17 = vector.extract_strided_slice %9 {offsets = [0, 0], sizes = [16, 8], strides = [1, 1]} : vector<16x32xf32> to vector<16x8xf32>
    %18 = vector.shape_cast %17 : vector<16x8xf32> to vector<2x8x8xf32>
    %19 = vector.extract_strided_slice %11 {offsets = [0, 0], sizes = [16, 8], strides = [1, 1]} : vector<16x32xf32> to vector<16x8xf32>
    %20 = vector.shape_cast %19 : vector<16x8xf32> to vector<2x8x8xf32>
    "tpu.trace_start"() <{level = 10 : i32, message = "bqd,bkd->bqk"}> : () -> ()
    %cst_20 = arith.constant dense<0.000000e+00> : vector<2x8x8xf32>
    %21 = tpu.matmul %16, %18, %cst_20 {dimension_numbers = #tpu.dot_dimension_numbers<[2], [2], [1], [1], [0, 0, 0, 1, 1, 1], [0], [0]>} : vector<2x8x8xf32>, vector<2x8x8xf32>, vector<2x8x8xf32> -> vector<2x8x8xf32>
    %cst_21 = arith.constant -1.000000e+20 : f32
    "tpu.trace_stop"() : () -> ()
    %22 = vector.broadcast %cst_21 : f32 to vector<2x8x8xf32>
    %23 = arith.select %14, %22, %21 : vector<2x8x8xi1>, vector<2x8x8xf32>
    %cst_22 = arith.constant 0.176776692 : f32
    %24 = vector.broadcast %cst_22 : f32 to vector<2x8x8xf32>
    %25 = arith.mulf %23, %24 : vector<2x8x8xf32>
    %cst_23 = arith.constant dense<0xFF800000> : vector<2x8xf32>
    %26 = vector.multi_reduction <maximumf>, %25, %cst_23 [2] : vector<2x8x8xf32> to vector<2x8xf32>
    %27 = vector.shape_cast %26 : vector<2x8xf32> to vector<2x8x1xf32>
    %28 = vector.broadcast %27 : vector<2x8x1xf32> to vector<2x8x8xf32>
    %29 = arith.subf %25, %28 : vector<2x8x8xf32>
    %30 = math.exp %29 : vector<2x8x8xf32>
    %cst_24 = arith.constant dense<0.000000e+00> : vector<2x8xf32>
    %31 = vector.multi_reduction <add>, %30, %cst_24 [2] : vector<2x8x8xf32> to vector<2x8xf32>
    %32 = vector.shape_cast %31 : vector<2x8xf32> to vector<2x8x1xf32>
    %33 = tpu.reciprocal %32 {approx = true} : vector<2x8x1xf32> -> vector<2x8x1xf32>
    %34 = vector.broadcast %33 : vector<2x8x1xf32> to vector<2x8x8xf32>
    %35 = arith.mulf %30, %34 : vector<2x8x8xf32>
    "tpu.trace_start"() <{level = 10 : i32, message = "bqk,bkd->bqd"}> : () -> ()
    %cst_25 = arith.constant dense<0.000000e+00> : vector<2x8x8xf32>
    %36 = tpu.matmul %35, %20, %cst_25 {dimension_numbers = #tpu.dot_dimension_numbers<[2], [1], [1], [2], [0, 0, 0, 1, 1, 2], [0], [0]>} : vector<2x8x8xf32>, vector<2x8x8xf32>, vector<2x8x8xf32> -> vector<2x8x8xf32>
    "tpu.trace_stop"() : () -> ()
    %37 = vector.shape_cast %36 : vector<2x8x8xf32> to vector<16x8xf32>
    %c0_26 = arith.constant 0 : index
    %c0_27 = arith.constant 0 : index
    %38 = vector.load %arg14[%c0_26, %c0_27] : memref<16x32xf32, #tpu.memory_space<vmem>>, vector<16x8xf32>
    tpu.vector_store %arg14[%c0_26, %c0_27], %37 {strides = array<i32>} : memref<16x32xf32, #tpu.memory_space<vmem>>, vector<16x8xf32>,
    %39 = vector.extract_strided_slice %7 {offsets = [0, 8], sizes = [16, 8], strides = [1, 1]} : vector<16x32xf32> to vector<16x8xf32>
    %40 = vector.shape_cast %39 : vector<16x8xf32> to vector<2x8x8xf32>
    %41 = vector.extract_strided_slice %9 {offsets = [0, 8], sizes = [16, 8], strides = [1, 1]} : vector<16x32xf32> to vector<16x8xf32>
    %42 = vector.shape_cast %41 : vector<16x8xf32> to vector<2x8x8xf32>
    %43 = vector.extract_strided_slice %11 {offsets = [0, 8], sizes = [16, 8], strides = [1, 1]} : vector<16x32xf32> to vector<16x8xf32>
    %44 = vector.shape_cast %43 : vector<16x8xf32> to vector<2x8x8xf32>
    "tpu.trace_start"() <{level = 10 : i32, message = "bqd,bkd->bqk"}> : () -> ()
    %cst_28 = arith.constant dense<0.000000e+00> : vector<2x8x8xf32>
    %45 = tpu.matmul %40, %42, %cst_28 {dimension_numbers = #tpu.dot_dimension_numbers<[2], [2], [1], [1], [0, 0, 0, 1, 1, 1], [0], [0]>} : vector<2x8x8xf32>, vector<2x8x8xf32>, vector<2x8x8xf32> -> vector<2x8x8xf32>
    %cst_29 = arith.constant -1.000000e+20 : f32
    "tpu.trace_stop"() : () -> ()
    %46 = vector.broadcast %cst_29 : f32 to vector<2x8x8xf32>
    %47 = arith.select %14, %46, %45 : vector<2x8x8xi1>, vector<2x8x8xf32>
    %cst_30 = arith.constant 0.176776692 : f32
    %48 = vector.broadcast %cst_30 : f32 to vector<2x8x8xf32>
    %49 = arith.mulf %47, %48 : vector<2x8x8xf32>
    %cst_31 = arith.constant dense<0xFF800000> : vector<2x8xf32>
    %50 = vector.multi_reduction <maximumf>, %49, %cst_31 [2] : vector<2x8x8xf32> to vector<2x8xf32>
    %51 = vector.shape_cast %50 : vector<2x8xf32> to vector<2x8x1xf32>
    %52 = vector.broadcast %51 : vector<2x8x1xf32> to vector<2x8x8xf32>
    %53 = arith.subf %49, %52 : vector<2x8x8xf32>
    %54 = math.exp %53 : vector<2x8x8xf32>
    %cst_32 = arith.constant dense<0.000000e+00> : vector<2x8xf32>
    %55 = vector.multi_reduction <add>, %54, %cst_32 [2] : vector<2x8x8xf32> to vector<2x8xf32>
    %56 = vector.shape_cast %55 : vector<2x8xf32> to vector<2x8x1xf32>
    %57 = tpu.reciprocal %56 {approx = true} : vector<2x8x1xf32> -> vector<2x8x1xf32>
    %58 = vector.broadcast %57 : vector<2x8x1xf32> to vector<2x8x8xf32>
    %59 = arith.mulf %54, %58 : vector<2x8x8xf32>
    "tpu.trace_start"() <{level = 10 : i32, message = "bqk,bkd->bqd"}> : () -> ()
    %cst_33 = arith.constant dense<0.000000e+00> : vector<2x8x8xf32>
    %60 = tpu.matmul %59, %44, %cst_33 {dimension_numbers = #tpu.dot_dimension_numbers<[2], [1], [1], [2], [0, 0, 0, 1, 1, 2], [0], [0]>} : vector<2x8x8xf32>, vector<2x8x8xf32>, vector<2x8x8xf32> -> vector<2x8x8xf32>
    "tpu.trace_stop"() : () -> ()
    %61 = vector.shape_cast %60 : vector<2x8x8xf32> to vector<16x8xf32>
    %c0_34 = arith.constant 0 : index
    %c8 = arith.constant 8 : index
    %62 = vector.load %arg14[%c0_34, %c8] : memref<16x32xf32, #tpu.memory_space<vmem>>, vector<16x8xf32>
    tpu.vector_store %arg14[%c0_34, %c8], %61 {strides = array<i32>} : memref<16x32xf32, #tpu.memory_space<vmem>>, vector<16x8xf32>,
    %63 = vector.extract_strided_slice %7 {offsets = [0, 16], sizes = [16, 8], strides = [1, 1]} : vector<16x32xf32> to vector<16x8xf32>
    %64 = vector.shape_cast %63 : vector<16x8xf32> to vector<2x8x8xf32>
    %65 = vector.extract_strided_slice %9 {offsets = [0, 16], sizes = [16, 8], strides = [1, 1]} : vector<16x32xf32> to vector<16x8xf32>
    %66 = vector.shape_cast %65 : vector<16x8xf32> to vector<2x8x8xf32>
    %67 = vector.extract_strided_slice %11 {offsets = [0, 16], sizes = [16, 8], strides = [1, 1]} : vector<16x32xf32> to vector<16x8xf32>
    %68 = vector.shape_cast %67 : vector<16x8xf32> to vector<2x8x8xf32>
    "tpu.trace_start"() <{level = 10 : i32, message = "bqd,bkd->bqk"}> : () -> ()
    %cst_35 = arith.constant dense<0.000000e+00> : vector<2x8x8xf32>
    %69 = tpu.matmul %64, %66, %cst_35 {dimension_numbers = #tpu.dot_dimension_numbers<[2], [2], [1], [1], [0, 0, 0, 1, 1, 1], [0], [0]>} : vector<2x8x8xf32>, vector<2x8x8xf32>, vector<2x8x8xf32> -> vector<2x8x8xf32>
    %cst_36 = arith.constant -1.000000e+20 : f32
    "tpu.trace_stop"() : () -> ()
    %70 = vector.broadcast %cst_36 : f32 to vector<2x8x8xf32>
    %71 = arith.select %14, %70, %69 : vector<2x8x8xi1>, vector<2x8x8xf32>
    %cst_37 = arith.constant 0.176776692 : f32
    %72 = vector.broadcast %cst_37 : f32 to vector<2x8x8xf32>
    %73 = arith.mulf %71, %72 : vector<2x8x8xf32>
    %cst_38 = arith.constant dense<0xFF800000> : vector<2x8xf32>
    %74 = vector.multi_reduction <maximumf>, %73, %cst_38 [2] : vector<2x8x8xf32> to vector<2x8xf32>
    %75 = vector.shape_cast %74 : vector<2x8xf32> to vector<2x8x1xf32>
    %76 = vector.broadcast %75 : vector<2x8x1xf32> to vector<2x8x8xf32>
    %77 = arith.subf %73, %76 : vector<2x8x8xf32>
    %78 = math.exp %77 : vector<2x8x8xf32>
    %cst_39 = arith.constant dense<0.000000e+00> : vector<2x8xf32>
    %79 = vector.multi_reduction <add>, %78, %cst_39 [2] : vector<2x8x8xf32> to vector<2x8xf32>
    %80 = vector.shape_cast %79 : vector<2x8xf32> to vector<2x8x1xf32>
    %81 = tpu.reciprocal %80 {approx = true} : vector<2x8x1xf32> -> vector<2x8x1xf32>
    %82 = vector.broadcast %81 : vector<2x8x1xf32> to vector<2x8x8xf32>
    %83 = arith.mulf %78, %82 : vector<2x8x8xf32>
    "tpu.trace_start"() <{level = 10 : i32, message = "bqk,bkd->bqd"}> : () -> ()
    %cst_40 = arith.constant dense<0.000000e+00> : vector<2x8x8xf32>
    %84 = tpu.matmul %83, %68, %cst_40 {dimension_numbers = #tpu.dot_dimension_numbers<[2], [1], [1], [2], [0, 0, 0, 1, 1, 2], [0], [0]>} : vector<2x8x8xf32>, vector<2x8x8xf32>, vector<2x8x8xf32> -> vector<2x8x8xf32>
    "tpu.trace_stop"() : () -> ()
    %85 = vector.shape_cast %84 : vector<2x8x8xf32> to vector<16x8xf32>
    %c0_41 = arith.constant 0 : index
    %c16 = arith.constant 16 : index
    %86 = vector.load %arg14[%c0_41, %c16] : memref<16x32xf32, #tpu.memory_space<vmem>>, vector<16x8xf32>
    tpu.vector_store %arg14[%c0_41, %c16], %85 {strides = array<i32>} : memref<16x32xf32, #tpu.memory_space<vmem>>, vector<16x8xf32>,
    %87 = vector.extract_strided_slice %7 {offsets = [0, 24], sizes = [16, 8], strides = [1, 1]} : vector<16x32xf32> to vector<16x8xf32>
    %88 = vector.shape_cast %87 : vector<16x8xf32> to vector<2x8x8xf32>
    %89 = vector.extract_strided_slice %9 {offsets = [0, 24], sizes = [16, 8], strides = [1, 1]} : vector<16x32xf32> to vector<16x8xf32>
    %90 = vector.shape_cast %89 : vector<16x8xf32> to vector<2x8x8xf32>
    %91 = vector.extract_strided_slice %11 {offsets = [0, 24], sizes = [16, 8], strides = [1, 1]} : vector<16x32xf32> to vector<16x8xf32>
    %92 = vector.shape_cast %91 : vector<16x8xf32> to vector<2x8x8xf32>
    "tpu.trace_start"() <{level = 10 : i32, message = "bqd,bkd->bqk"}> : () -> ()
    %cst_42 = arith.constant dense<0.000000e+00> : vector<2x8x8xf32>
    %93 = tpu.matmul %88, %90, %cst_42 {dimension_numbers = #tpu.dot_dimension_numbers<[2], [2], [1], [1], [0, 0, 0, 1, 1, 1], [0], [0]>} : vector<2x8x8xf32>, vector<2x8x8xf32>, vector<2x8x8xf32> -> vector<2x8x8xf32>
    %cst_43 = arith.constant -1.000000e+20 : f32
    "tpu.trace_stop"() : () -> ()
    %94 = vector.broadcast %cst_43 : f32 to vector<2x8x8xf32>
    %95 = arith.select %14, %94, %93 : vector<2x8x8xi1>, vector<2x8x8xf32>
    %cst_44 = arith.constant 0.176776692 : f32
    %96 = vector.broadcast %cst_44 : f32 to vector<2x8x8xf32>
    %97 = arith.mulf %95, %96 : vector<2x8x8xf32>
    %cst_45 = arith.constant dense<0xFF800000> : vector<2x8xf32>
    %98 = vector.multi_reduction <maximumf>, %97, %cst_45 [2] : vector<2x8x8xf32> to vector<2x8xf32>
    %99 = vector.shape_cast %98 : vector<2x8xf32> to vector<2x8x1xf32>
    %100 = vector.broadcast %99 : vector<2x8x1xf32> to vector<2x8x8xf32>
    %101 = arith.subf %97, %100 : vector<2x8x8xf32>
    %102 = math.exp %101 : vector<2x8x8xf32>
    %cst_46 = arith.constant dense<0.000000e+00> : vector<2x8xf32>
    %103 = vector.multi_reduction <add>, %102, %cst_46 [2] : vector<2x8x8xf32> to vector<2x8xf32>
    %104 = vector.shape_cast %103 : vector<2x8xf32> to vector<2x8x1xf32>
    %105 = tpu.reciprocal %104 {approx = true} : vector<2x8x1xf32> -> vector<2x8x1xf32>
    %106 = vector.broadcast %105 : vector<2x8x1xf32> to vector<2x8x8xf32>
    %107 = arith.mulf %102, %106 : vector<2x8x8xf32>
    "tpu.trace_start"() <{level = 10 : i32, message = "bqk,bkd->bqd"}> : () -> ()
    %cst_47 = arith.constant dense<0.000000e+00> : vector<2x8x8xf32>
    %108 = tpu.matmul %107, %92, %cst_47 {dimension_numbers = #tpu.dot_dimension_numbers<[2], [1], [1], [2], [0, 0, 0, 1, 1, 2], [0], [0]>} : vector<2x8x8xf32>, vector<2x8x8xf32>, vector<2x8x8xf32> -> vector<2x8x8xf32>
    "tpu.trace_stop"() : () -> ()
    %109 = vector.shape_cast %108 : vector<2x8x8xf32> to vector<16x8xf32>
    %c0_48 = arith.constant 0 : index
    %c24 = arith.constant 24 : index
    %110 = vector.load %arg14[%c0_48, %c24] : memref<16x32xf32, #tpu.memory_space<vmem>>, vector<16x8xf32>
    tpu.vector_store %arg14[%c0_48, %c24], %109 {strides = array<i32>} : memref<16x32xf32, #tpu.memory_space<vmem>>, vector<16x8xf32>,
    %c0_49 = arith.constant 0 : index
    %c0_50 = arith.constant 0 : index
    %111 = vector.load %arg12[%c0_49, %c0_50] : memref<8x32xf32, #tpu.memory_space<vmem>>, vector<1x32xf32>
    %c1 = arith.constant 1 : index
    %c0_51 = arith.constant 0 : index
    %112 = vector.load %arg12[%c1, %c0_51] : memref<8x32xf32, #tpu.memory_space<vmem>>, vector<1x32xf32>
    %c2 = arith.constant 2 : index
    %c0_52 = arith.constant 0 : index
    %113 = vector.load %arg12[%c2, %c0_52] : memref<8x32xf32, #tpu.memory_space<vmem>>, vector<1x32xf32>
    %c3 = arith.constant 3 : index
    %c0_53 = arith.constant 0 : index
    %114 = vector.load %arg12[%c3, %c0_53] : memref<8x32xf32, #tpu.memory_space<vmem>>, vector<1x32xf32>
    %c4 = arith.constant 4 : index
    %c0_54 = arith.constant 0 : index
    %115 = vector.load %arg12[%c4, %c0_54] : memref<8x32xf32, #tpu.memory_space<vmem>>, vector<1x32xf32>
    %c5 = arith.constant 5 : index
    %c0_55 = arith.constant 0 : index
    %116 = vector.load %arg12[%c5, %c0_55] : memref<8x32xf32, #tpu.memory_space<vmem>>, vector<1x32xf32>
    %c0_56 = arith.constant 0 : index
    %c0_57 = arith.constant 0 : index
    %117 = vector.load %arg14[%c0_56, %c0_57] : memref<16x32xf32, #tpu.memory_space<vmem>>, vector<16x32xf32>
    %c0_58 = arith.constant 0 : index
    %c0_59 = arith.constant 0 : index
    %118 = vector.load %arg8[%c0_58, %c0_59] : memref<32x32xf32, #tpu.memory_space<vmem>>, vector<32x32xf32>
    %cst_60 = arith.constant dense<0.000000e+00> : vector<16x32xf32>
    %119 = tpu.matmul %117, %118, %cst_60 {dimension_numbers = #tpu.dot_dimension_numbers<[1], [0], [0], [1], [0, 0, 1, 1], [], []>} : vector<16x32xf32>, vector<32x32xf32>, vector<16x32xf32> -> vector<16x32xf32>
    %120 = vector.broadcast %111 : vector<1x32xf32> to vector<16x32xf32>
    %121 = arith.addf %119, %120 : vector<16x32xf32>
    %122 = arith.addf %121, %1 : vector<16x32xf32>
    %cst_61 = arith.constant dense<0.000000e+00> : vector<16xf32>
    %123 = vector.multi_reduction <add>, %122, %cst_61 [1] : vector<16x32xf32> to vector<16xf32>
    %124 = vector.shape_cast %123 : vector<16xf32> to vector<16x1xf32>
    %cst_62 = arith.constant 3.200000e+01 : f32
    %125 = vector.broadcast %cst_62 : f32 to vector<16x1xf32>
    %126 = arith.divf %124, %125 : vector<16x1xf32>
    %127 = vector.broadcast %126 : vector<16x1xf32> to vector<16x32xf32>
    %128 = arith.subf %122, %127 : vector<16x32xf32>
    %129 = arith.mulf %128, %128 : vector<16x32xf32>
    %cst_63 = arith.constant dense<0.000000e+00> : vector<16xf32>
    %130 = vector.multi_reduction <add>, %129, %cst_63 [1] : vector<16x32xf32> to vector<16xf32>
    %131 = vector.shape_cast %130 : vector<16xf32> to vector<16x1xf32>
    %cst_64 = arith.constant 3.200000e+01 : f32
    %132 = vector.broadcast %cst_64 : f32 to vector<16x1xf32>
    %133 = arith.divf %131, %132 : vector<16x1xf32>
    %134 = vector.broadcast %126 : vector<16x1xf32> to vector<16x32xf32>
    %135 = arith.subf %122, %134 : vector<16x32xf32>
    %cst_65 = arith.constant 9.99999974E-6 : f32
    %136 = vector.broadcast %cst_65 : f32 to vector<16x1xf32>
    %137 = arith.addf %133, %136 : vector<16x1xf32>
    %138 = math.rsqrt %137 : vector<16x1xf32>
    %139 = vector.broadcast %138 : vector<16x1xf32> to vector<16x32xf32>
    %140 = arith.mulf %135, %139 : vector<16x32xf32>
    %141 = vector.broadcast %112 : vector<1x32xf32> to vector<16x32xf32>
    %142 = arith.mulf %140, %141 : vector<16x32xf32>
    %143 = vector.broadcast %113 : vector<1x32xf32> to vector<16x32xf32>
    %144 = arith.addf %142, %143 : vector<16x32xf32>
    %c0_66 = arith.constant 0 : index
    %c0_67 = arith.constant 0 : index
    %145 = vector.load %arg9[%c0_66, %c0_67] : memref<32x64xf32, #tpu.memory_space<vmem>>, vector<32x64xf32>
    %cst_68 = arith.constant dense<0.000000e+00> : vector<16x64xf32>
    %146 = tpu.matmul %144, %145, %cst_68 {dimension_numbers = #tpu.dot_dimension_numbers<[1], [0], [0], [1], [0, 0, 1, 1], [], []>} : vector<16x32xf32>, vector<32x64xf32>, vector<16x64xf32> -> vector<16x64xf32>
    %c0_69 = arith.constant 0 : index
    %c0_70 = arith.constant 0 : index
    %147 = vector.load %arg10[%c0_69, %c0_70] : memref<1x64xf32, #tpu.memory_space<vmem>>, vector<1x64xf32>
    %148 = vector.broadcast %147 : vector<1x64xf32> to vector<16x64xf32>
    %149 = arith.addf %146, %148 : vector<16x64xf32>
    %cst_71 = arith.constant 0.000000e+00 : f32
    %150 = vector.broadcast %cst_71 : f32 to vector<16x64xf32>
    %151 = arith.maximumf %149, %150 : vector<16x64xf32>
    %c0_72 = arith.constant 0 : index
    %c0_73 = arith.constant 0 : index
    %152 = vector.load %arg11[%c0_72, %c0_73] : memref<64x32xf32, #tpu.memory_space<vmem>>, vector<64x32xf32>
    %cst_74 = arith.constant dense<0.000000e+00> : vector<16x32xf32>
    %153 = tpu.matmul %151, %152, %cst_74 {dimension_numbers = #tpu.dot_dimension_numbers<[1], [0], [0], [1], [0, 0, 1, 1], [], []>} : vector<16x64xf32>, vector<64x32xf32>, vector<16x32xf32> -> vector<16x32xf32>
    %154 = vector.broadcast %114 : vector<1x32xf32> to vector<16x32xf32>
    %155 = arith.addf %153, %154 : vector<16x32xf32>
    %156 = arith.addf %155, %144 : vector<16x32xf32>
    %cst_75 = arith.constant dense<0.000000e+00> : vector<16xf32>
    %157 = vector.multi_reduction <add>, %156, %cst_75 [1] : vector<16x32xf32> to vector<16xf32>
    %158 = vector.shape_cast %157 : vector<16xf32> to vector<16x1xf32>
    %cst_76 = arith.constant 3.200000e+01 : f32
    %159 = vector.broadcast %cst_76 : f32 to vector<16x1xf32>
    %160 = arith.divf %158, %159 : vector<16x1xf32>
    %161 = vector.broadcast %160 : vector<16x1xf32> to vector<16x32xf32>
    %162 = arith.subf %156, %161 : vector<16x32xf32>
    %163 = arith.mulf %162, %162 : vector<16x32xf32>
    %cst_77 = arith.constant dense<0.000000e+00> : vector<16xf32>
    %164 = vector.multi_reduction <add>, %163, %cst_77 [1] : vector<16x32xf32> to vector<16xf32>
    %165 = vector.shape_cast %164 : vector<16xf32> to vector<16x1xf32>
    %cst_78 = arith.constant 3.200000e+01 : f32
    %166 = vector.broadcast %cst_78 : f32 to vector<16x1xf32>
    %167 = arith.divf %165, %166 : vector<16x1xf32>
    %168 = vector.broadcast %160 : vector<16x1xf32> to vector<16x32xf32>
    %169 = arith.subf %156, %168 : vector<16x32xf32>
    %cst_79 = arith.constant 9.99999974E-6 : f32
    %170 = vector.broadcast %cst_79 : f32 to vector<16x1xf32>
    %171 = arith.addf %167, %170 : vector<16x1xf32>
    %172 = math.rsqrt %171 : vector<16x1xf32>
    %173 = vector.broadcast %172 : vector<16x1xf32> to vector<16x32xf32>
    %174 = arith.mulf %169, %173 : vector<16x32xf32>
    %175 = vector.broadcast %115 : vector<1x32xf32> to vector<16x32xf32>
    %176 = arith.mulf %174, %175 : vector<16x32xf32>
    %177 = vector.broadcast %116 : vector<1x32xf32> to vector<16x32xf32>
    %178 = arith.addf %176, %177 : vector<16x32xf32>
    %179 = vector.shape_cast %178 : vector<16x32xf32> to vector<2x8x32xf32>
    %c0_80 = arith.constant 0 : index
    %c0_81 = arith.constant 0 : index
    %c0_82 = arith.constant 0 : index
    %180 = vector.load %arg13[%c0_80, %c0_81, %c0_82] : memref<2x8x32xf32, #tpu.memory_space<vmem>>, vector<2x8x32xf32>
    tpu.vector_store %arg13[%c0_80, %c0_81, %c0_82], %179 {strides = array<i32>} : memref<2x8x32xf32, #tpu.memory_space<vmem>>, vector<2x8x32xf32>,
    return
  }
  func.func @transform_0(%arg0: i32) -> (i32, i32, i32) {
    %c0_i32 = arith.constant 0 : i32
    %c0_i32_0 = arith.constant 0 : i32
    %c0_i32_1 = arith.constant 0 : i32
    return %arg0, %c0_i32, %c0_i32_0 : i32, i32, i32
  }
  func.func @transform_1(%arg0: i32) -> (i32, i32, i32) {
    %c0_i32 = arith.constant 0 : i32
    %c0_i32_0 = arith.constant 0 : i32
    %c0_i32_1 = arith.constant 0 : i32
    return %arg0, %c0_i32, %c0_i32_0 : i32, i32, i32
  }
  func.func @transform_2(%arg0: i32) -> (i32, i32, i32) {
    %c0_i32 = arith.constant 0 : i32
    %c0_i32_0 = arith.constant 0 : i32
    %c0_i32_1 = arith.constant 0 : i32
    return %arg0, %c0_i32, %c0_i32_0 : i32, i32, i32
  }
  func.func @transform_3(%arg0: i32) -> (i32, i32, i32) {
    %c0_i32 = arith.constant 0 : i32
    %c0_i32_0 = arith.constant 0 : i32
    %c0_i32_1 = arith.constant 0 : i32
    return %arg0, %c0_i32, %c0_i32_0 : i32, i32, i32
  }
  func.func @transform_4(%arg0: i32) -> (i32, i32) {
    %c0_i32 = arith.constant 0 : i32
    %c0_i32_0 = arith.constant 0 : i32
    %c0_i32_1 = arith.constant 0 : i32
    return %c0_i32, %c0_i32_0 : i32, i32
  }
  func.func @transform_5(%arg0: i32) -> (i32, i32) {
    %c0_i32 = arith.constant 0 : i32
    %c0_i32_0 = arith.constant 0 : i32
    %c0_i32_1 = arith.constant 0 : i32
    return %c0_i32, %c0_i32_0 : i32, i32
  }
  func.func @transform_6(%arg0: i32) -> (i32, i32) {
    %c0_i32 = arith.constant 0 : i32
    %c0_i32_0 = arith.constant 0 : i32
    %c0_i32_1 = arith.constant 0 : i32
    return %c0_i32, %c0_i32_0 : i32, i32
  }
  func.func @transform_7(%arg0: i32) -> (i32, i32) {
    %c0_i32 = arith.constant 0 : i32
    %c0_i32_0 = arith.constant 0 : i32
    %c0_i32_1 = arith.constant 0 : i32
    return %c0_i32, %c0_i32_0 : i32, i32
  }
  func.func @transform_8(%arg0: i32) -> (i32, i32) {
    %c0_i32 = arith.constant 0 : i32
    %c0_i32_0 = arith.constant 0 : i32
    %c0_i32_1 = arith.constant 0 : i32
    return %c0_i32, %c0_i32_0 : i32, i32
  }
  func.func @transform_9(%arg0: i32) -> (i32, i32) {
    %c0_i32 = arith.constant 0 : i32
    %c0_i32_0 = arith.constant 0 : i32
    %c0_i32_1 = arith.constant 0 : i32
    return %c0_i32, %c0_i32_0 : i32, i32
  }
  func.func @transform_10(%arg0: i32) -> (i32, i32) {
    %c0_i32 = arith.constant 0 : i32
    %c0_i32_0 = arith.constant 0 : i32
    %c0_i32_1 = arith.constant 0 : i32
    return %c0_i32, %c0_i32_0 : i32, i32
  }
  func.func @transform_11(%arg0: i32) -> (i32, i32) {
    %c0_i32 = arith.constant 0 : i32
    %c0_i32_0 = arith.constant 0 : i32
    %c0_i32_1 = arith.constant 0 : i32
    return %c0_i32, %c0_i32_0 : i32, i32
  }
  func.func @transform_12(%arg0: i32) -> (i32, i32, i32) {
    %c0_i32 = arith.constant 0 : i32
    %c0_i32_0 = arith.constant 0 : i32
    %c0_i32_1 = arith.constant 0 : i32
    return %arg0, %c0_i32, %c0_i32_0 : i32, i32, i32
  }
}

</mosaic_0001>

<bundles_post_ra>
// kernel: tpu_custom_call.1
= control target key start
LH: loop header
LB: loop body
LE: loop exit
PB: predicated region body
PF: predicated region fallthrough
CT: control target
= control target key end

     0   :  { %17 = vsyncpa [#allocation4], 0  ;;  %s3025_s0 = inlined_call_operand.hbm [shape: f32[2,8,8], index: 0, kind: input, shape index: {}]   ;;  %s3026_s1 = inlined_call_operand.hbm [shape: f32[2,8,32], index: 1, kind: input, shape index: {}]   ;;  %s3027_s2 = inlined_call_operand.hbm [shape: f32[2,8,32], index: 2, kind: input, shape index: {}]   ;;  %s3028_s3 = inlined_call_operand.hbm [shape: f32[2,8,32], index: 3, kind: input, shape index: {}]   ;;  %s3029_s4 = inlined_call_operand.vmem [shape: f32[32,32], index: 4, kind: input, shape index: {}]   ;;  %s3030_s5 = inlined_call_operand.vmem [shape: f32[32,32], index: 5, kind: input, shape index: {}]   ;;  %s3031_s6 = inlined_call_operand.vmem [shape: f32[32,32], index: 6, kind: input, shape index: {}]   ;;  %s3032_s7 = inlined_call_operand.hbm [shape: f32[32,32], index: 7, kind: input, shape index: {}]   ;;  %s3033_s8 = inlined_call_operand.hbm [shape: f32[32,64], index: 8, kind: input, shape index: {}]   ;;  %s3034_s9 = inlined_call_operand.vmem [shape: f32[1,64], index: 9, kind: input, shape index: {}]   ;;  %s3035_s10 = inlined_call_operand.vmem [shape: f32[64,32], index: 10, kind: input, shape index: {}]   ;;  %s3036_s11 = inlined_call_operand.vmem [shape: f32[8,32], index: 11, kind: input, shape index: {}]   ;;  %s3037_s12 = inlined_call_operand.hbm [shape: f32[2,8,32], index: 12, kind: output, shape index: {}]  }
   0x1   :  { %18 = vsyncpa [#allocation7], 0 }
   0x2   :  { %19 = vsyncpa [#allocation10], 0 }
   0x3   :  { %20 = vsyncpa [#allocation13], 0 }
   0x4   :  { %21 = vsyncpa [#allocation5], 0  ;;  %s2617_s21 = smov [#allocation6]   ;;  %s2618_s23 = smov [#allocation9]  }
   0x5   :  { %s39_s22 = sshll.u32 %s2617_s21, 4  ;;  %s63_s24 = sshll.u32 %s2618_s23, 4  ;;  %s40_s22 = int_to_ptr.vmem [resolvable:$true] %s39_s22  ;;  %s64_s24 = int_to_ptr.vmem [resolvable:$true] %s63_s24 }
   0x6   :  { %s2475_s25 = scalar_lea.vmem %s40_s22, 256  ;;  %p2480_p1 = scmp.lt.s32.totalorder %s40_s22, %s40_s22 }
   0x7   :  { %p2476_p0 = scmp.ne.s32.totalorder %s40_s22, %s2475_s25  ;;  %p2481_p2 = scmp.lt.s32.totalorder %s2475_s25, %s2475_s25 }
   0x9   :  { %p2482_p3 = por %p2481_p2, %p2480_p1 }
   0xb   :  { %p2483_p4 = pnand %p2482_p3, %p2476_p0 }
   0xd   :  { %2486 = shalt.err (!%p2483_p4)
}
   0xe   :  { %s2619_s26 = smov 128   ;;  %s2620_s27 = smov 8  }
   0xf   :  { %45 = dma.hbm_to_vmem [thread:$0]  %s3026_s1, 256, %s40_s22, [#allocation7], %s2619_s26, %s2619_s26, %s2620_s27  }
  0x10   :  { %s2495_s30 = scalar_lea.vmem %s64_s24, 256  ;;  %p2500_p6 = scmp.lt.s32.totalorder %s64_s24, %s64_s24 }
  0x11   :  { %p2496_p5 = scmp.ne.s32.totalorder %s64_s24, %s2495_s30  ;;  %p2501_p7 = scmp.lt.s32.totalorder %s2495_s30, %s2495_s30 }
  0x13   :  { %p2502_p8 = por %p2501_p7, %p2500_p6 }
  0x15   :  { %p2503_p9 = pnand %p2502_p8, %p2496_p5 }
  0x17   :  { %2506 = shalt.err (!%p2503_p9)
}
  0x18   :  { %69 = dma.hbm_to_vmem [thread:$0]  %s3028_s3, 256, %s64_s24, [#allocation10], %s2619_s26, %s2619_s26, %s2620_s27  }
  0x19   :  { %s2621_s15 = smov [#allocation3]   ;;  %s2622_s17 = smov [#allocation8]  }
  0x1a   :  { %s27_s16 = sshll.u32 %s2621_s15, 4  ;;  %s51_s18 = sshll.u32 %s2622_s17, 4  ;;  %s28_s16 = int_to_ptr.vmem [resolvable:$true] %s27_s16  ;;  %s52_s18 = int_to_ptr.vmem [resolvable:$true] %s51_s18 }
  0x1b   :  { %s2515_s1 = scalar_lea.vmem %s28_s16, 256  ;;  %p2520_p11 = scmp.lt.s32.totalorder %s28_s16, %s28_s16 }
  0x1c   :  { %p2516_p10 = scmp.ne.s32.totalorder %s28_s16, %s2515_s1  ;;  %p2521_p12 = scmp.lt.s32.totalorder %s2515_s1, %s2515_s1 }
  0x1e   :  { %p2522_p13 = por %p2521_p12, %p2520_p11 }
  0x20   :  { %p2523_p0 = pnand %p2522_p13, %p2516_p10 }
  0x22   :  { %2526 = shalt.err (!%p2523_p0)
}
  0x23   :  { %33 = dma.hbm_to_vmem [thread:$0]  %s3025_s0, 256, %s28_s16, [#allocation4], %s2619_s26, %s2619_s26, %s2620_s27  }
  0x24   :  { %s2535_s3 = scalar_lea.vmem %s52_s18, 256  ;;  %p2540_p2 = scmp.lt.s32.totalorder %s52_s18, %s52_s18 }
  0x25   :  { %p2536_p1 = scmp.ne.s32.totalorder %s52_s18, %s2535_s3  ;;  %p2541_p3 = scmp.lt.s32.totalorder %s2535_s3, %s2535_s3 }
  0x27   :  { %p2542_p4 = por %p2541_p3, %p2540_p2 }
  0x29   :  { %p2543_p5 = pnand %p2542_p4, %p2536_p1 }
  0x2b   :  { %2546 = shalt.err (!%p2543_p5)
}
  0x2c   :  { %57 = dma.hbm_to_vmem [thread:$0]  %s3027_s2, 256, %s52_s18, [#allocation7], %s2619_s26, %s2619_s26, %s2620_s27  }
  0x2d   :  { %s2623_s23 = smov [#allocation11]   ;;  %s2624_s25 = smov [#allocation12]  }
  0x2e   :  { %s81_s24 = sshll.u32 %s2623_s23, 4  ;;  %s93_s28 = sshll.u32 %s2624_s25, 4  ;;  %s82_s24 = int_to_ptr.vmem [resolvable:$true] %s81_s24  ;;  %s94_s28 = int_to_ptr.vmem [resolvable:$true] %s93_s28 }
  0x2f   :  { %s2555_s0 = scalar_lea.vmem %s82_s24, 512  ;;  %p2560_p7 = scmp.lt.s32.totalorder %s82_s24, %s82_s24 }
  0x30   :  { %p2556_p6 = scmp.ne.s32.totalorder %s82_s24, %s2555_s0  ;;  %p2561_p8 = scmp.lt.s32.totalorder %s2555_s0, %s2555_s0 }
  0x32   :  { %p2562_p9 = por %p2561_p8, %p2560_p7 }
  0x34   :  { %p2563_p10 = pnand %p2562_p9, %p2556_p6 }
  0x36   :  { %2566 = shalt.err (!%p2563_p10)
}
  0x37   :  { %87 = dma.hbm_to_vmem [thread:$0]  %s3032_s7, 512, %s82_s24, [#allocation10], %s2619_s26, %s2619_s26, %s2620_s27  }
  0x38   :  { %s2575_s2 = scalar_lea.vmem %s94_s28, 512  ;;  %p2580_p12 = scmp.lt.s32.totalorder %s94_s28, %s94_s28 }
  0x39   :  { %p2576_p11 = scmp.ne.s32.totalorder %s94_s28, %s2575_s2  ;;  %p2581_p13 = scmp.lt.s32.totalorder %s2575_s2, %s2575_s2 }
  0x3b   :  { %p2582_p0 = por %p2581_p13, %p2580_p12 }
  0x3d   :  { %p2583_p1 = pnand %p2582_p0, %p2576_p11 }
  0x3f   :  { %2586 = shalt.err (!%p2583_p1)
}
  0x40   :  { %99 = dma.hbm_to_vmem [thread:$0]  %s3033_s8, 512, %s94_s28, [#allocation13], %s2619_s26, %s2619_s26, %s2620_s27  }
  0x41   :  { %2607 = dma.done.wait [#allocation4], 256  }
  0x42   :  { %2608 = vsyncadd [#allocation4], 4294967040 }
  0x43   :  { %2609 = dma.done.wait [#allocation7], 512  }
  0x44   :  { %2610 = vsyncadd [#allocation7], 4294966784 }
  0x45   :  { %2611 = dma.done.wait [#allocation10], 768  }
  0x46   :  { %2612 = vsyncadd [#allocation10], 4294966528 }
  0x47   :  { %2613 = dma.done.wait [#allocation13], 512  }
  0x48   :  { %2614 = vsyncadd [#allocation13], 4294966784  ;;  %vm134_vm0 = vcmask 261120   ;;  %v133_v0 = vld [vmem:[%s3029_s4 + $0x18] sm:$0xff]  ;;  %v132_v1 = vld [vmem:[%s3029_s4 + $0x10] sm:$0xff]  ;;  %v2625_v12 = vmov 0.0  }
  0x49   :  { %2257 = vmatprep.subr.mxu1 %v133_v0  ;;  %v2740_v2 = vld [vmem:[#allocation6] sm:$0xff]  ;;  %v131_v3 = vld [vmem:[%s3029_s4 + $0x8] sm:$0xff]  ;;  %v219_v6 = vld [vmem:[%s3030_s5 + $0x18] sm:$0xff]  ;;  %vm2626_vm1 = vmmov 0   ;;  %vm390_vm2 = vcmask 64512   ;;  %s2629_s15 = smov 104  }
  0x4a   :  { %2258 = vmatpush3.msra.mxu1 %v133_v0  ;;  %2265 = vmatprep.mubr.msk.f32.mxu1 %vm134_vm0, %v2740_v2  ;;  %v130_v4 = vld [vmem:[%s3029_s4] sm:$0xff]  ;;  %v2750_v5 = vld [vmem:[#allocation6 + $0x8] sm:$0xff]  ;;  %v126_v7 = vld [vmem:[#allocation8] sm:$0xff]  ;;  %s2630_s16 = smov 16   ;;  %vm1061_vm5 = vcmask 130112   ;;  %vm1406_vm6 = vcmask 195712  }
  0x4b   :  { %2259 = vmatprep.subr.mxu1 %v132_v1  ;;  %v218_v8 = vld [vmem:[%s3030_s5 + $0x10] sm:$0xff]  ;;  %v217_v9 = vld [vmem:[%s3030_s5 + $0x8] sm:$0xff]  ;;  %v216_v10 = vld [vmem:[%s3030_s5] sm:$0xff]  ;;  %s2627_s5 = smov 120   ;;  %s2631_s17 = smov 24   ;;  %vm1751_vm7 = vcmask 261312  }
  0x4c   :  { %2260 = vmatpush3.msra.mxu1 %v132_v1  ;;  %v127_v11 = vld [vmem:[#allocation8 + $0x8] sm:$0xff]  ;;  %v303_v18 = vld [vmem:[%s3031_s6 + $0x10] sm:$0xff]  ;;  %v128_v19 = vld [vmem:[#allocation9] sm:$0xff]  ;;  %vm1998_vm8 = vcmask 523264   ;;  %s2632_s19 = smov [#allocation14]  }
  0x4d   :  { %2261 = vmatprep.subr.mxu1 %v131_v3  ;;  %v304_v17 = vld [vmem:[%s3031_s6 + $0x18] sm:$0xff]  ;;  %v302_v20 = vld [vmem:[%s3031_s6 + $0x8] sm:$0xff]  ;;  %2287 = vmatprep.mubr.msk.f32.mxu0 %vm134_vm0, %v128_v19  ;;  %v301_v21 = vld [vmem:[%s3031_s6] sm:$0xff]  ;;  %s2628_s6 = smov 112   ;;  %s2127_s20 = sshll.u32 %s2632_s19, 4  ;;  %s2128_s20 = int_to_ptr.vmem [resolvable:$true] %s2127_s20 }
  0x4e   :  { %2262 = vmatpush3.msra.mxu1 %v131_v3  ;;  %2279 = vmatprep.subr.mxu0 %v304_v17  ;;  %v129_v22 = vld [vmem:[#allocation9 + $0x8] sm:$0xff]  ;;  %v2814_v23 = vld [vmem:[#allocation3] sm:$0xff]  ;;  %v2817_v24 = vld [vmem:[#allocation3 + $0x8] sm:$0xff]  ;;  %s2587_s3 = scalar_lea.vmem %s2128_s20, 256  ;;  %p2592_p3 = scmp.lt.s32.totalorder %s2128_s20, %s2128_s20 }
  0x4f   :  { %2263 = vmatprep.subr.mxu1 %v130_v4  ;;  %2280 = vmatpush3.msra.mxu0 %v304_v17  ;;  %vm388_vm3 = vcmp.eq.f32.partialorder %v2814_v23, 0.0  ;;  %vm389_vm4 = vcmp.eq.f32.partialorder %v2817_v24, 0.0  ;;  %p2588_p2 = scmp.ne.s32.totalorder %s2128_s20, %s2587_s3  ;;  %p2593_p4 = scmp.lt.s32.totalorder %s2587_s3, %s2587_s3 }
  0x50   :  { %2264 = vmatpush3.msra.mxu1 %v130_v4  ;;  %2281 = vmatprep.subr.mxu0 %v303_v18 }
  0x51   :  { %2266 = vmatmul.mubr.msk.f32.vlgmr.msra.gmra.mxu1 %vm134_vm0, %v2750_v5  ;;  %2268 = vmatprep.subr.mxu1 %v219_v6  ;;  %p2594_p5 = por %p2593_p4, %p2592_p3 }
  0x52   :  { %2269 = vmatpush3.msra.mxu1 %v219_v6  ;;  %2276 = vmatprep.mubr.msk.f32.mxu1 %vm134_vm0, %v126_v7 }
  0x53   :  { %2270 = vmatprep.subr.mxu1 %v218_v8  ;;  %2282 = vmatpush3.msra.mxu0 %v303_v18  ;;  %p2595_p6 = pnand %p2594_p5, %p2588_p2 }
  0x54   :  { %2271 = vmatpush3.msra.mxu1 %v218_v8  ;;  %2283 = vmatprep.subr.mxu0 %v302_v20 }
  0x55   :  { %2272 = vmatprep.subr.mxu1 %v217_v9  ;;  %2284 = vmatpush3.msra.mxu0 %v302_v20 }
  0x56   :  { %2273 = vmatpush3.msra.mxu1 %v217_v9  ;;  %2285 = vmatprep.subr.mxu0 %v301_v21 }
  0x57   :  { %2274 = vmatprep.subr.mxu1 %v216_v10  ;;  %2286 = vmatpush3.msra.mxu0 %v301_v21 }
  0x58   :  { %2275 = vmatpush3.msra.mxu1 %v216_v10  ;;  %2288 = vmatmul.mubr.msk.f32.vlgmr.msra.gmra.mxu0 %vm134_vm0, %v129_v22 }
  0x59   :  { %2277 = vmatmul.mubr.msk.f32.vlgmr.msra.gmra.mxu1 %vm134_vm0, %v127_v11  ;;  %2290 = vmatprep.subr.mxu1 %v2625_v12 }
  0x5a   :  { %2292 = vmatprep.mubr.msk.f32.mxu1 %vm2626_vm1, %v2625_v12  ;;  %2300 = vmatprep.subr.mxu0 %v2625_v12 }
  0x5b   :  { %2302 = vmatprep.mubr.msk.f32.mxu0 %vm2626_vm1, %v2625_v12 }
 0x111   :  { %v2771_v13 = vpop.f32.mrf.mxu1 }
 0x113   :  { %v2773_v14 = vpop.f32.mrf.mxu1 }
 0x118   :  { %v2830_v45 = vpop.f32.mrf.mxu0 }
 0x119   :  { %v2775_v15 = vpop.f32.mrf.mxu1 }
 0x11a   :  { %797 = vrot.lane.b32.xlu1 %v2775_v15, %s2627_s5  ;;  %v2833_v46 = vpop.f32.mrf.mxu0 }
 0x11b   :  { %v2779_v16 = vpop.f32.mrf.mxu1  ;;  %2301 = vmatpush3.msra.mxu0 %v2833_v46 }
 0x11c   :  { %2291 = vmatpush3.xpose.msk.msra.mxu1 %vm390_vm2, %v2779_v16  ;;  %2310 = vmatprep.subr.mxu0 %v2625_v12 }
 0x11d   :  { %2295 = vmatprep.subr.mxu1 %v2625_v12 }
 0x11e   :  { %717 = vrot.lane.b32.xlu1 %v2773_v14, %s2627_s5 }
 0x11f   :  { %2293 = vmatmul.mubr.msk.f32.vlgmr.msra.gmra.mxu1 %vm390_vm2, %v2773_v14 }
 0x120   :  { %2296 = vmatpush3.xpose.msk.msra.mxu1 %vm390_vm2, %v2775_v15  ;;  %2297 = vmatprep.mubr.msk.f32.mxu1 %vm2626_vm1, %v2625_v12 }
 0x121   :  { %2305 = vmatprep.subr.mxu1 %v2625_v12 }
 0x123   :  { %2298 = vmatmul.mubr.msk.f32.vlgmr.msra.gmra.mxu1 %vm390_vm2, %v2771_v13 }
 0x124   :  { %2307 = vmatprep.mubr.msk.f32.mxu1 %vm2626_vm1, %v2625_v12  ;;  %2306 = vmatpush3.msra.mxu1 %v2830_v45 }
 0x125   :  { %2315 = vmatprep.subr.mxu1 %v2625_v12 }
 0x18c   :  { %v798_v47 = vpop.permute.xlu1 %797 }
 0x190   :  { %v718_v48 = vpop.permute.xlu1 %717 }
 0x1df   :  { %v463_v25 = vpop.f32.mrf.mxu1 }
 0x1e0   :  { %v543_v26 = vsel %vm388_vm3, -1e+20, %v463_v25 }
 0x1e1   :  { %v545_v27 = vmul.f32 0.17677669, %v543_v26  ;;  %v2294_v28 = vpop.f32.mrf.mxu1 }
 0x1e3   :  { %v539_v29 = vpop.f32.mrf.mxu1  ;;  %v547_v30 = vsel %vm390_vm2, %v545_v27, -inf }
 0x1e4   :  { %v544_v31 = vsel %vm389_vm4, -1e+20, %v539_v29  ;;  %548 = vmax.xlane.f32.xlu0 %v547_v30 }
 0x1e5   :  { %v546_v32 = vmul.f32 0.17677669, %v544_v31  ;;  %v2299_v33 = vpop.f32.mrf.mxu1 }
 0x1e7   :  { %v550_v34 = vsel %vm390_vm2, %v546_v32, -inf }
 0x1e8   :  { %551 = vmax.xlane.f32.xlu0 %v550_v34 }
 0x1fe   :  { %719 = vrot.lane.b32.xlu0 %v2779_v16, %s2627_s5 }
 0x26d   :  { %v549_v35 = vpop.xlane.xlu0 %548 }
 0x26e   :  { %v553_v36 = vsub.f32 %v545_v27, %v549_v35 }
 0x270   :  { %v555_v37 = vmul.f32 1.442695, %v553_v36 }
 0x271   :  { %v552_v38 = vpop.xlane.xlu0 %551 }
 0x272   :  { %2427 = vpow2.f32 %v555_v37  ;;  %v554_v39 = vsub.f32 %v546_v32, %v552_v38 }
 0x274   :  { %v557_v40 = vmul.f32 1.442695, %v554_v39 }
 0x275   :  { %v720_v53 = vpop.permute.xlu0 %719 }
 0x276   :  { %2429 = vpow2.f32 %v557_v40 }
 0x27f   :  { %v2428_v41 = vpop.eup %2427 }
 0x280   :  { %v559_v42 = vsel %vm390_vm2, %v2428_v41, 0.0 }
 0x281   :  { %560 = vadd.xlane.f32.xlu1 %v559_v42 }
 0x283   :  { %v2430_v43 = vpop.eup %2429 }
 0x284   :  { %v562_v44 = vsel %vm390_vm2, %v2430_v43, 0.0 }
 0x285   :  { %563 = vadd.xlane.f32.xlu1 %v562_v44 }
 0x296   :  { %795 = vrot.lane.b32.xlu1 %v2771_v13, %s2627_s5 }
 0x30a   :  { %v561_v49 = vpop.xlane.xlu1 %560 }
 0x30b   :  { %2431 = vrcp.f32 %v561_v49 }
 0x30e   :  { %v564_v50 = vpop.xlane.xlu1 %563 }
 0x30f   :  { %2433 = vrcp.f32 %v564_v50 }
 0x312   :  { %v796_v56 = vpop.permute.xlu1 %795 }
 0x318   :  { %v2432_v51 = vpop.eup %2431 }
 0x319   :  { %v567_v52 = vmul.f32 %v2432_v51, %v2428_v41 }
 0x31b   :  { %2303 = vmatmul.mubr.msk.f32.vlgmr.msra.gmra.mxu0 %vm390_vm2, %v567_v52 }
 0x31c   :  { %v2434_v54 = vpop.eup %2433  ;;  %2311 = vmatpush3.xpose.msk.msra.mxu0 %vm390_vm2, %v720_v53  ;;  %2312 = vmatprep.mubr.msk.f32.mxu0 %vm2626_vm1, %v2625_v12 }
 0x31d   :  { %v568_v55 = vmul.f32 %v2434_v54, %v2430_v43  ;;  %2320 = vmatprep.subr.mxu0 %v2625_v12 }
 0x31f   :  { %2308 = vmatmul.mubr.msk.f32.vlgmr.msra.gmra.mxu1 %vm390_vm2, %v568_v55  ;;  %2313 = vmatmul.mubr.msk.f32.vlgmr.msra.gmra.mxu0 %vm390_vm2, %v718_v48 }
 0x320   :  { %2316 = vmatpush3.xpose.msk.msra.mxu1 %vm390_vm2, %v798_v47  ;;  %2317 = vmatprep.mubr.msk.f32.mxu1 %vm2626_vm1, %v2625_v12 }
 0x321   :  { %2325 = vmatprep.subr.mxu1 %v2625_v12  ;;  %2322 = vmatprep.mubr.msk.f32.mxu0 %vm2626_vm1, %v2625_v12 }
 0x323   :  { %2318 = vmatmul.mubr.msk.f32.vlgmr.msra.gmra.mxu1 %vm390_vm2, %v796_v56 }
 0x324   :  { %2327 = vmatprep.mubr.msk.f32.mxu1 %vm2626_vm1, %v2625_v12 }
 0x3db   :  { %v638_v57 = vpop.f32.mrf.mxu0 }
 0x3dc   :  { %715 = vst.msk [vmem:[#allocation2] sm:$0xff] %vm390_vm2, %v638_v57 }
 0x3dd   :  { %v2304_v58 = vpop.f32.mrf.mxu0 }
 0x3df   :  { %v711_v59 = vpop.f32.mrf.mxu1  ;;  %v791_v60 = vpop.f32.mrf.mxu0 }
 0x3e0   :  { %716 = vst.msk [vmem:[#allocation2 + $0x8] sm:$0xff] %vm390_vm2, %v711_v59  ;;  %v873_v61 = vsel %vm388_vm3, -1e+20, %v791_v60 }
 0x3e1   :  { %v875_v62 = vmul.f32 0.17677669, %v873_v61  ;;  %v2309_v63 = vpop.f32.mrf.mxu1  ;;  %v2314_v0 = vpop.f32.mrf.mxu0 }
 0x3e3   :  { %v869_v1 = vpop.f32.mrf.mxu1  ;;  %v877_v3 = vsel %vm390_vm2, %v875_v62, -inf }
 0x3e4   :  { %v874_v4 = vsel %vm389_vm4, -1e+20, %v869_v1  ;;  %878 = vmax.xlane.f32.xlu0 %v877_v3 }
 0x3e5   :  { %v876_v6 = vmul.f32 0.17677669, %v874_v4  ;;  %v2319_v7 = vpop.f32.mrf.mxu1 }
 0x3e7   :  { %v880_v8 = vsel %vm390_vm2, %v876_v6, -inf }
 0x3e8   :  { %881 = vmax.xlane.f32.xlu1 %v880_v8 }
 0x3f9   :  { %977 = vrot.lane.b32.xlu1 %v2830_v45, %s2627_s5 }
 0x3fa   :  { %900 = vrot.lane.b32.xlu0 %v2833_v46, %s2627_s5 }
 0x3fd   :  { %1066 = vrot.lane.b32.xlu1 %v2779_v16, %s2628_s6 }
 0x401   :  { %1144 = vrot.lane.b32.xlu1 %v2775_v15, %s2628_s6 }
 0x405   :  { %1142 = vrot.lane.b32.xlu1 %v2771_v13, %s2628_s6 }
 0x46d   :  { %v879_v9 = vpop.xlane.xlu0 %878 }
 0x46e   :  { %v883_v10 = vsub.f32 %v875_v62, %v879_v9 }
 0x470   :  { %v885_v11 = vmul.f32 1.442695, %v883_v10 }
 0x471   :  { %v901_v17 = vpop.permute.xlu0 %900  ;;  %v882_v18 = vpop.xlane.xlu1 %881 }
 0x472   :  { %2435 = vpow2.f32 %v885_v11  ;;  %v884_v19 = vsub.f32 %v876_v6, %v882_v18  ;;  %2321 = vmatpush3.msra.mxu0 %v901_v17 }
 0x473   :  { %2330 = vmatprep.subr.mxu0 %v2625_v12 }
 0x474   :  { %v887_v20 = vmul.f32 1.442695, %v884_v19 }
 0x475   :  { %v978_v21 = vpop.permute.xlu1 %977 }
 0x476   :  { %2437 = vpow2.f32 %v887_v20  ;;  %2326 = vmatpush3.msra.mxu1 %v978_v21 }
 0x477   :  { %2335 = vmatprep.subr.mxu1 %v2625_v12 }
 0x479   :  { %v1067_v30 = vpop.permute.xlu1 %1066 }
 0x47d   :  { %v1145_v34 = vpop.permute.xlu1 %1144 }
 0x47f   :  { %v2436_v22 = vpop.eup %2435 }
 0x480   :  { %v889_v25 = vsel %vm390_vm2, %v2436_v22, 0.0 }
 0x481   :  { %890 = vadd.xlane.f32.xlu0 %v889_v25  ;;  %v1143_v37 = vpop.permute.xlu1 %1142 }
 0x483   :  { %v2438_v26 = vpop.eup %2437 }
 0x484   :  { %v892_v27 = vsel %vm390_vm2, %v2438_v26, 0.0 }
 0x485   :  { %893 = vadd.xlane.f32.xlu0 %v892_v27 }
 0x49b   :  { %1064 = vrot.lane.b32.xlu0 %v2773_v14, %s2628_s6 }
 0x50a   :  { %v891_v28 = vpop.xlane.xlu0 %890 }
 0x50b   :  { %2439 = vrcp.f32 %v891_v28 }
 0x50e   :  { %v894_v29 = vpop.xlane.xlu0 %893 }
 0x50f   :  { %2441 = vrcp.f32 %v894_v29 }
 0x512   :  { %v1065_v36 = vpop.permute.xlu0 %1064 }
 0x518   :  { %v2440_v31 = vpop.eup %2439 }
 0x519   :  { %v897_v32 = vmul.f32 %v2440_v31, %v2436_v22 }
 0x51b   :  { %2323 = vmatmul.mubr.msk.f32.vlgmr.msra.gmra.mxu0 %vm390_vm2, %v897_v32 }
 0x51c   :  { %v2442_v33 = vpop.eup %2441  ;;  %2331 = vmatpush3.xpose.msk.msra.mxu0 %vm390_vm2, %v1067_v30  ;;  %2332 = vmatprep.mubr.msk.f32.mxu0 %vm2626_vm1, %v2625_v12 }
 0x51d   :  { %v898_v35 = vmul.f32 %v2442_v33, %v2438_v26  ;;  %2340 = vmatprep.subr.mxu0 %v2625_v12 }
 0x51f   :  { %2328 = vmatmul.mubr.msk.f32.vlgmr.msra.gmra.mxu1 %vm390_vm2, %v898_v35  ;;  %2333 = vmatmul.mubr.msk.f32.vlgmr.msra.gmra.mxu0 %vm390_vm2, %v1065_v36 }
 0x520   :  { %2336 = vmatpush3.xpose.msk.msra.mxu1 %vm390_vm2, %v1145_v34  ;;  %2337 = vmatprep.mubr.msk.f32.mxu1 %vm2626_vm1, %v2625_v12 }
 0x521   :  { %2345 = vmatprep.subr.mxu1 %v2625_v12  ;;  %2342 = vmatprep.mubr.msk.f32.mxu0 %vm2626_vm1, %v2625_v12 }
 0x523   :  { %2338 = vmatmul.mubr.msk.f32.vlgmr.msra.gmra.mxu1 %vm390_vm2, %v1143_v37 }
 0x524   :  { %2347 = vmatprep.mubr.msk.f32.mxu1 %vm2626_vm1, %v2625_v12 }
 0x5db   :  { %v2896_v38 = vpop.f32.mrf.mxu0 }
 0x5dd   :  { %v2324_v39 = vpop.f32.mrf.mxu0 }
 0x5df   :  { %v2898_v40 = vpop.f32.mrf.mxu1  ;;  %v1138_v41 = vpop.f32.mrf.mxu0 }
 0x5e0   :  { %v1220_v42 = vsel %vm388_vm3, -1e+20, %v1138_v41 }
 0x5e1   :  { %v1222_v43 = vmul.f32 0.17677669, %v1220_v42  ;;  %v2329_v44 = vpop.f32.mrf.mxu1  ;;  %v2334_v47 = vpop.f32.mrf.mxu0 }
 0x5e3   :  { %v1216_v48 = vpop.f32.mrf.mxu1  ;;  %v1224_v49 = vsel %vm390_vm2, %v1222_v43, -inf }
 0x5e4   :  { %v1221_v50 = vsel %vm389_vm4, -1e+20, %v1216_v48  ;;  %1225 = vmax.xlane.f32.xlu0 %v1224_v49 }
 0x5e5   :  { %v1223_v51 = vmul.f32 0.17677669, %v1221_v50  ;;  %v2339_v52 = vpop.f32.mrf.mxu1 }
 0x5e6   :  { %v1763_v52 = vld [vmem:[#allocation11 + $0x8] sm:$0xff] }
 0x5e7   :  { %v1227_v53 = vsel %vm390_vm2, %v1223_v51, -inf }
 0x5e8   :  { %1228 = vmax.xlane.f32.xlu1 %v1227_v53  ;;  %v1762_v53 = vld [vmem:[#allocation11] sm:$0xff] }
 0x5f9   :  { %1322 = vrot.lane.b32.xlu1 %v2830_v45, %s2628_s6 }
 0x5fa   :  { %1246 = vrot.lane.b32.xlu0 %v2833_v46, %s2628_s6 }
 0x5fd   :  { %1411 = vrot.lane.b32.xlu1 %v2779_v16, %s2629_s15 }
 0x601   :  { %1489 = vrot.lane.b32.xlu1 %v2775_v15, %s2629_s15 }
 0x605   :  { %1487 = vrot.lane.b32.xlu1 %v2771_v13, %s2629_s15 }
 0x66d   :  { %v1226_v54 = vpop.xlane.xlu0 %1225 }
 0x66e   :  { %v1230_v55 = vsub.f32 %v1222_v43, %v1226_v54 }
 0x670   :  { %v1232_v56 = vmul.f32 1.442695, %v1230_v55 }
 0x671   :  { %v1247_v57 = vpop.permute.xlu0 %1246  ;;  %v1229_v58 = vpop.xlane.xlu1 %1228 }
 0x672   :  { %2443 = vpow2.f32 %v1232_v56  ;;  %v1231_v59 = vsub.f32 %v1223_v51, %v1229_v58  ;;  %2341 = vmatpush3.msra.mxu0 %v1247_v57  ;;  %v1765_v51 = vld [vmem:[#allocation11 + $0x18] sm:$0xff] }
 0x673   :  { %2350 = vmatprep.subr.mxu0 %v2625_v12 }
 0x674   :  { %v1234_v60 = vmul.f32 1.442695, %v1231_v59 }
 0x675   :  { %v1323_v61 = vpop.permute.xlu1 %1322 }
 0x676   :  { %2445 = vpow2.f32 %v1234_v60  ;;  %2346 = vmatpush3.msra.mxu1 %v1323_v61 }
 0x677   :  { %2355 = vmatprep.subr.mxu1 %v2625_v12 }
 0x679   :  { %v1412_v1 = vpop.permute.xlu1 %1411 }
 0x67d   :  { %v1490_v7 = vpop.permute.xlu1 %1489 }
 0x67f   :  { %v2444_v15 = vpop.eup %2443 }
 0x680   :  { %v1236_v16 = vsel %vm390_vm2, %v2444_v15, 0.0 }
 0x681   :  { %1237 = vadd.xlane.f32.xlu0 %v1236_v16  ;;  %v1488_v9 = vpop.permute.xlu1 %1487 }
 0x683   :  { %v2446_v13 = vpop.eup %2445 }
 0x684   :  { %v1239_v62 = vsel %vm390_vm2, %v2446_v13, 0.0 }
 0x685   :  { %1240 = vadd.xlane.f32.xlu0 %v1239_v62 }
 0x69b   :  { %1409 = vrot.lane.b32.xlu0 %v2773_v14, %s2629_s15 }
 0x70a   :  { %v1238_v63 = vpop.xlane.xlu0 %1237 }
 0x70b   :  { %2447 = vrcp.f32 %v1238_v63 }
 0x70e   :  { %v1241_v0 = vpop.xlane.xlu0 %1240 }
 0x70f   :  { %2449 = vrcp.f32 %v1241_v0 }
 0x712   :  { %v1410_v14 = vpop.permute.xlu0 %1409 }
 0x718   :  { %v2448_v3 = vpop.eup %2447 }
 0x719   :  { %v1244_v4 = vmul.f32 %v2448_v3, %v2444_v15  ;;  %v2172_v15 = vld [vmem:[%s3036_s11] ss:$0 sm:$0xff] }
 0x71b   :  { %2343 = vmatmul.mubr.msk.f32.vlgmr.msra.gmra.mxu0 %vm390_vm2, %v1244_v4 }
 0x71c   :  { %v2450_v6 = vpop.eup %2449  ;;  %2351 = vmatpush3.xpose.msk.msra.mxu0 %vm390_vm2, %v1412_v1  ;;  %2352 = vmatprep.mubr.msk.f32.mxu0 %vm2626_vm1, %v2625_v12 }
 0x71d   :  { %v1245_v8 = vmul.f32 %v2450_v6, %v2446_v13  ;;  %2360 = vmatprep.subr.mxu0 %v2625_v12 }
 0x71f   :  { %2348 = vmatmul.mubr.msk.f32.vlgmr.msra.gmra.mxu1 %vm390_vm2, %v1245_v8  ;;  %2353 = vmatmul.mubr.msk.f32.vlgmr.msra.gmra.mxu0 %vm390_vm2, %v1410_v14 }
 0x720   :  { %2356 = vmatpush3.xpose.msk.msra.mxu1 %vm390_vm2, %v1490_v7  ;;  %2357 = vmatprep.mubr.msk.f32.mxu1 %vm2626_vm1, %v2625_v12 }
 0x721   :  { %2365 = vmatprep.subr.mxu1 %v2625_v12  ;;  %2362 = vmatprep.mubr.msk.f32.mxu0 %vm2626_vm1, %v2625_v12 }
 0x723   :  { %2358 = vmatmul.mubr.msk.f32.vlgmr.msra.gmra.mxu1 %vm390_vm2, %v1488_v9 }
 0x724   :  { %2367 = vmatprep.mubr.msk.f32.mxu1 %vm2626_vm1, %v2625_v12 }
 0x7db   :  { %v1318_v10 = vpop.f32.mrf.mxu0 }
 0x7dd   :  { %v2344_v11 = vpop.f32.mrf.mxu0 }
 0x7df   :  { %v1394_v17 = vpop.f32.mrf.mxu1  ;;  %v1483_v18 = vpop.f32.mrf.mxu0 }
 0x7e0   :  { %v1565_v19 = vsel %vm388_vm3, -1e+20, %v1483_v18 }
 0x7e1   :  { %v1567_v20 = vmul.f32 0.17677669, %v1565_v19  ;;  %v2349_v21 = vpop.f32.mrf.mxu1  ;;  %v2354_v22 = vpop.f32.mrf.mxu0  ;;  %v1895_v19 = vld [vmem:[#allocation12 + $0x18] sm:$0xff] }
 0x7e2   :  { %v1892_v21 = vld [vmem:[#allocation12] sm:$0xff]  ;;  %v1993_v22 = vld [vmem:[%s3035_s10 + $0x38] sm:$0xff] }
 0x7e3   :  { %v1561_v25 = vpop.f32.mrf.mxu1  ;;  %v1569_v26 = vsel %vm390_vm2, %v1567_v20, -inf }
 0x7e4   :  { %v1566_v27 = vsel %vm389_vm4, -1e+20, %v1561_v25  ;;  %1570 = vmax.xlane.f32.xlu0 %v1569_v26  ;;  %v1992_v25 = vld [vmem:[%s3035_s10 + $0x30] sm:$0xff]  ;;  %v1991_v26 = vld [vmem:[%s3035_s10 + $0x28] sm:$0xff] }
 0x7e5   :  { %v1568_v28 = vmul.f32 0.17677669, %v1566_v27  ;;  %v2359_v29 = vpop.f32.mrf.mxu1  ;;  %v1990_v27 = vld [vmem:[%s3035_s10 + $0x20] sm:$0xff] }
 0x7e7   :  { %v1572_v12 = vsel %vm390_vm2, %v1568_v28, -inf }
 0x7e8   :  { %1573 = vmax.xlane.f32.xlu1 %v1572_v12 }
 0x7f9   :  { %1667 = vrot.lane.b32.xlu1 %v2830_v45, %s2629_s15 }
 0x7fd   :  { %1055 = vrot.lane.b32.xlu1 %v2896_v38, %s2620_s27 }
 0x801   :  { %1057 = vrot.lane.b32.xlu1 %v2898_v40, %s2620_s27 }
 0x805   :  { %1402 = vrot.lane.b32.xlu1 %v1394_v17, %s2630_s16 }
 0x86d   :  { %v1571_v23 = vpop.xlane.xlu0 %1570 }
 0x86e   :  { %v1575_v24 = vsub.f32 %v1567_v20, %v1571_v23  ;;  %v1893_v20 = vld [vmem:[#allocation12 + $0x8] sm:$0xff] }
 0x870   :  { %v1577_v30 = vmul.f32 1.442695, %v1575_v24 }
 0x871   :  { %v1574_v31 = vpop.xlane.xlu1 %1573 }
 0x872   :  { %2451 = vpow2.f32 %v1577_v30  ;;  %v1576_v32 = vsub.f32 %v1568_v28, %v1574_v31 }
 0x874   :  { %v1579_v33 = vmul.f32 1.442695, %v1576_v32  ;;  %v2175_v32 = vld [vmem:[%s3036_s11 + $0x1] ss:$0 sm:$0xff] }
 0x875   :  { %v1668_v34 = vpop.permute.xlu1 %1667 }
 0x876   :  { %2453 = vpow2.f32 %v1579_v33  ;;  %2366 = vmatpush3.msra.mxu1 %v1668_v34  ;;  %v2176_v34 = vld [vmem:[%s3036_s11 + $0x2] ss:$0 sm:$0xff] }
 0x877   :  { %2381 = vmatprep.subr.mxu1 %v1895_v19 }
 0x879   :  { %v1056_v45 = vpop.permute.xlu1 %1055 }
 0x87a   :  { %1062 = vst.msk [vmem:[#allocation2] sm:$0xff] %vm1061_vm5, %v1056_v45 }
 0x87d   :  { %v1058_v35 = vpop.permute.xlu1 %1057 }
 0x87e   :  { %1063 = vst.msk [vmem:[#allocation2 + $0x8] sm:$0xff] %vm1061_vm5, %v1058_v35 }
 0x87f   :  { %v2452_v36 = vpop.eup %2451 }
 0x880   :  { %v1581_v37 = vsel %vm390_vm2, %v2452_v36, 0.0 }
 0x881   :  { %1582 = vadd.xlane.f32.xlu0 %v1581_v37  ;;  %v1403_v38 = vpop.permute.xlu1 %1402 }
 0x882   :  { %1408 = vst.msk [vmem:[#allocation2 + $0x8] sm:$0xff] %vm1406_vm6, %v1403_v38 }
 0x883   :  { %v2454_v39 = vpop.eup %2453 }
 0x884   :  { %v1584_v40 = vsel %vm390_vm2, %v2454_v39, 0.0 }
 0x885   :  { %1585 = vadd.xlane.f32.xlu0 %v1584_v40  ;;  %v1989_v40 = vld [vmem:[%s3035_s10 + $0x18] sm:$0xff] }
 0x89b   :  { %1591 = vrot.lane.b32.xlu0 %v2833_v46, %s2629_s15  ;;  %v1764_v46 = vld [vmem:[#allocation11 + $0x10] sm:$0xff] }
 0x89f   :  { %1400 = vrot.lane.b32.xlu0 %v1318_v10, %s2630_s16 }
 0x90a   :  { %v1583_v41 = vpop.xlane.xlu0 %1582 }
 0x90b   :  { %2455 = vrcp.f32 %v1583_v41  ;;  %v1988_v41 = vld [vmem:[%s3035_s10 + $0x10] sm:$0xff] }
 0x90e   :  { %v1586_v42 = vpop.xlane.xlu0 %1585 }
 0x90f   :  { %2457 = vrcp.f32 %v1586_v42  ;;  %v1987_v42 = vld [vmem:[%s3035_s10 + $0x8] sm:$0xff] }
 0x912   :  { %v1592_v43 = vpop.permute.xlu0 %1591 }
 0x913   :  { %2361 = vmatpush3.msra.mxu0 %v1592_v43  ;;  %v1986_v43 = vld [vmem:[%s3035_s10] sm:$0xff] }
 0x914   :  { %2370 = vmatprep.subr.mxu0 %v1765_v51 }
 0x916   :  { %v1401_v44 = vpop.permute.xlu0 %1400 }
 0x917   :  { %1407 = vst.msk [vmem:[#allocation2] sm:$0xff] %vm1406_vm6, %v1401_v44  ;;  %v2177_v44 = vld [vmem:[%s3034_s9] ss:$0 sm:$0xff] }
 0x918   :  { %v2456_v47 = vpop.eup %2455 }
 0x919   :  { %v1589_v48 = vmul.f32 %v2456_v47, %v2452_v36 }
 0x91b   :  { %2363 = vmatmul.mubr.msk.f32.vlgmr.msra.gmra.mxu0 %vm390_vm2, %v1589_v48 }
 0x91c   :  { %v2458_v49 = vpop.eup %2457  ;;  %2371 = vmatpush3.msra.mxu0 %v1765_v51 }
 0x91d   :  { %v1590_v50 = vmul.f32 %v2458_v49, %v2454_v39  ;;  %2372 = vmatprep.subr.mxu0 %v1764_v46 }
 0x91e   :  { %2373 = vmatpush3.msra.mxu0 %v1764_v46 }
 0x91f   :  { %2368 = vmatmul.mubr.msk.f32.vlgmr.msra.gmra.mxu1 %vm390_vm2, %v1590_v50  ;;  %2374 = vmatprep.subr.mxu0 %v1763_v52 }
 0x920   :  { %2375 = vmatpush3.msra.mxu0 %v1763_v52  ;;  %2382 = vmatpush3.msra.mxu1 %v1895_v19  ;;  %v2180_v52 = vld [vmem:[%s3036_s11 + $0x3] ss:$0 sm:$0xff]  ;;  %v2184_v19 = vld [vmem:[%s3036_s11 + $0x5] ss:$0 sm:$0xff] }
 0x921   :  { %2376 = vmatprep.subr.mxu0 %v1762_v53 }
 0x922   :  { %2377 = vmatpush3.msra.mxu0 %v1762_v53 }
 0x923   :  { %2392 = vmatprep.subr.mxu0 %v1993_v22 }
 0x9db   :  { %v1663_v54 = vpop.f32.mrf.mxu0 }
 0x9dc   :  { %1745 = vrot.lane.b32.xlu0 %v1663_v54, %s2631_s17 }
 0x9dd   :  { %v2364_v55 = vpop.f32.mrf.mxu0 }
 0x9df   :  { %v1739_v56 = vpop.f32.mrf.mxu1 }
 0x9e0   :  { %1747 = vrot.lane.b32.xlu1 %v1739_v56, %s2631_s17 }
 0x9e1   :  { %v2369_v57 = vpop.f32.mrf.mxu1 }
 0xa4e   :  { %v1746_v58 = vpop.permute.xlu0 %1745 }
 0xa4f   :  { %1752 = vst.msk [vmem:[#allocation2] sm:$0xff] %vm1751_vm7, %v1746_v58 }
 0xa52   :  { %v1748_v59 = vpop.permute.xlu1 %1747 }
 0xa53   :  { %1753 = vst.msk [vmem:[#allocation2 + $0x8] sm:$0xff] %vm1751_vm7, %v1748_v59 }
 0xa56   :  { %v1760_v60 = vld [vmem:[#allocation2] sm:$0xff] }
 0xa57   :  { %2378 = vmatprep.mubr.msk.f32.mxu0 %vm134_vm0, %v1760_v60 }
 0xa5a   :  { %v1761_v61 = vld [vmem:[#allocation2 + $0x8] sm:$0xff] }
 0xa5b   :  { %2379 = vmatmul.mubr.msk.f32.vlgmr.msra.gmra.mxu0 %vm134_vm0, %v1761_v61 }
 0xa5c   :  { %2393 = vmatpush3.msra.mxu0 %v1993_v22 }
 0xa5d   :  { %2394 = vmatprep.subr.mxu0 %v1992_v25 }
 0xa5e   :  { %2395 = vmatpush3.msra.mxu0 %v1992_v25 }
 0xa5f   :  { %2396 = vmatprep.subr.mxu0 %v1991_v26 }
 0xa60   :  { %2397 = vmatpush3.msra.mxu0 %v1991_v26 }
 0xa61   :  { %2398 = vmatprep.subr.mxu0 %v1990_v27 }
 0xa62   :  { %2399 = vmatpush3.msra.mxu0 %v1990_v27 }
 0xa63   :  { %2400 = vmatprep.subr.mxu0 %v1989_v40 }
 0xa64   :  { %2401 = vmatpush3.msra.mxu0 %v1989_v40 }
 0xa65   :  { %2402 = vmatprep.subr.mxu0 %v1988_v41 }
 0xa66   :  { %2403 = vmatpush3.msra.mxu0 %v1988_v41 }
 0xa67   :  { %2404 = vmatprep.subr.mxu0 %v1987_v42 }
 0xa68   :  { %2405 = vmatpush3.msra.mxu0 %v1987_v42 }
 0xa69   :  { %2406 = vmatprep.subr.mxu0 %v1986_v43 }
 0xa6a   :  { %2407 = vmatpush3.msra.mxu0 %v1986_v43 }
 0xb1b   :  { %v2380_v16 = vpop.f32.mrf.mxu0 }
 0xb1c   :  { %v1848_v13 = vadd.f32 %v2380_v16, %v2172_v15 }
 0xb1d   :  { %v1842_v62 = vpop.f32.mrf.mxu0 }
 0xb1e   :  { %v1843_v63 = vadd.f32 %v2172_v15, %v1842_v62  ;;  %v1852_v0 = vadd.f32 %v1848_v13, %v2750_v5 }
 0xb20   :  { %v1856_v1 = vsel %vm134_vm0, %v1852_v0, 0.0  ;;  %v1851_v3 = vadd.f32 %v1843_v63, %v2740_v2  ;;  %v1894_v2 = vld [vmem:[#allocation12 + $0x10] sm:$0xff] }
 0xb21   :  { %1857 = vadd.xlane.f32.xlu1 %v1856_v1  ;;  %2383 = vmatprep.subr.mxu1 %v1894_v2 }
 0xb22   :  { %v1853_v4 = vsel %vm134_vm0, %v1851_v3, 0.0  ;;  %2384 = vmatpush3.msra.mxu1 %v1894_v2 }
 0xb23   :  { %1854 = vadd.xlane.f32.xlu0 %v1853_v4  ;;  %2385 = vmatprep.subr.mxu1 %v1893_v20 }
 0xb24   :  { %2386 = vmatpush3.msra.mxu1 %v1893_v20 }
 0xb25   :  { %2387 = vmatprep.subr.mxu1 %v1892_v21 }
 0xb26   :  { %2388 = vmatpush3.msra.mxu1 %v1892_v21 }
 0xbaa   :  { %v1858_v6 = vpop.xlane.xlu1 %1857 }
 0xbab   :  { %v1861_v7 = vmul.f32 0.03125, %v1858_v6 }
 0xbac   :  { %v1855_v8 = vpop.xlane.xlu0 %1854 }
 0xbad   :  { %v1860_v14 = vmul.f32 0.03125, %v1855_v8  ;;  %v1863_v9 = vsub.f32 %v1852_v0, %v1861_v7 }
 0xbaf   :  { %v1862_v10 = vsub.f32 %v1851_v3, %v1860_v14  ;;  %v1865_v18 = vmul.f32 %v1863_v9, %v1863_v9 }
 0xbb1   :  { %v1864_v11 = vmul.f32 %v1862_v10, %v1862_v10  ;;  %v1869_v5 = vsel %vm134_vm0, %v1865_v18, 0.0 }
 0xbb3   :  { %v1866_v17 = vsel %vm134_vm0, %v1864_v11, 0.0 }
 0xbb4   :  { %1867 = vadd.xlane.f32.xlu0 %v1866_v17  ;;  %v2183_v17 = vld [vmem:[%s3036_s11 + $0x4] ss:$0 sm:$0xff] }
 0xbb8   :  { %1870 = vadd.xlane.f32.xlu0 %v1869_v5 }
 0xc3d   :  { %v1868_v28 = vpop.xlane.xlu0 %1867 }
 0xc3e   :  { %v1872_v29 = vmul.f32 0.03125, %v1868_v28 }
 0xc40   :  { %v1874_v12 = vadd.f32 1e-05, %v1872_v29 }
 0xc41   :  { %v1871_v23 = vpop.xlane.xlu0 %1870 }
 0xc42   :  { %2459 = vrsqrt.f32 %v1874_v12  ;;  %v1873_v24 = vmul.f32 0.03125, %v1871_v23 }
 0xc44   :  { %v1875_v30 = vadd.f32 1e-05, %v1873_v24 }
 0xc46   :  { %2461 = vrsqrt.f32 %v1875_v30 }
 0xc4f   :  { %v2460_v31 = vpop.eup %2459 }
 0xc50   :  { %v1878_v33 = vmul.f32 %v2460_v31, %v1862_v10 }
 0xc52   :  { %v1884_v45 = vmul.f32 %v2175_v32, %v1878_v33 }
 0xc53   :  { %v2462_v35 = vpop.eup %2461 }
 0xc54   :  { %v1879_v36 = vmul.f32 %v2462_v35, %v1863_v9  ;;  %v1890_v37 = vadd.f32 %v2176_v34, %v1884_v45 }
 0xc56   :  { %v1885_v38 = vmul.f32 %v2175_v32, %v1879_v36  ;;  %2389 = vmatprep.mubr.msk.f32.mxu1 %vm134_vm0, %v1890_v37 }
 0xc58   :  { %v1891_v39 = vadd.f32 %v2176_v34, %v1885_v38 }
 0xc5a   :  { %2390 = vmatmul.mubr.msk.f32.vlgmr.msra.gmra.mxu1 %vm134_vm0, %v1891_v39 }
 0xd1a   :  { %v2391_v47 = vpop.f32.mrf.mxu1 }
 0xd1b   :  { %v1981_v48 = vadd.f32 %v2391_v47, %v2177_v44 }
 0xd1c   :  { %v1975_v49 = vpop.f32.mrf.mxu1 }
 0xd1d   :  { %v1976_v50 = vadd.f32 %v2177_v44, %v1975_v49  ;;  %v1985_v46 = vmax.f32 %v1981_v48, 0.0 }
 0xd1f   :  { %v1984_v51 = vmax.f32 %v1976_v50, 0.0 }
 0xd21   :  { %2408 = vmatprep.mubr.msk.f32.mxu0 %vm1998_vm8, %v1984_v51 }
 0xd22   :  { %2409 = vmatmul.mubr.msk.f32.vlgmr.msra.gmra.mxu0 %vm1998_vm8, %v1985_v46 }
 0xde2   :  { %v2410_v53 = vpop.f32.mrf.mxu0 }
 0xde3   :  { %v2077_v54 = vadd.f32 %v2410_v53, %v2180_v52 }
 0xde4   :  { %v2071_v55 = vpop.f32.mrf.mxu0 }
 0xde5   :  { %v2072_v56 = vadd.f32 %v2180_v52, %v2071_v55  ;;  %v2081_v57 = vadd.f32 %v2077_v54, %v1891_v39 }
 0xde7   :  { %v2085_v58 = vsel %vm134_vm0, %v2081_v57, 0.0  ;;  %v2080_v59 = vadd.f32 %v2072_v56, %v1890_v37 }
 0xde8   :  { %2086 = vadd.xlane.f32.xlu1 %v2085_v58 }
 0xde9   :  { %v2082_v60 = vsel %vm134_vm0, %v2080_v59, 0.0 }
 0xdea   :  { %2083 = vadd.xlane.f32.xlu0 %v2082_v60 }
 0xe71   :  { %v2087_v61 = vpop.xlane.xlu1 %2086 }
 0xe72   :  { %v2089_v15 = vmul.f32 0.03125, %v2087_v61 }
 0xe73   :  { %v2084_v16 = vpop.xlane.xlu0 %2083 }
 0xe74   :  { %v2091_v13 = vsub.f32 %v2081_v57, %v2089_v15  ;;  %v2088_v62 = vmul.f32 0.03125, %v2084_v16 }
 0xe76   :  { %v2090_v63 = vsub.f32 %v2080_v59, %v2088_v62  ;;  %v2093_v0 = vmul.f32 %v2091_v13, %v2091_v13 }
 0xe78   :  { %v2097_v1 = vsel %vm134_vm0, %v2093_v0, 0.0  ;;  %v2092_v3 = vmul.f32 %v2090_v63, %v2090_v63 }
 0xe79   :  { %2098 = vadd.xlane.f32.xlu1 %v2097_v1 }
 0xe7a   :  { %v2094_v4 = vsel %vm134_vm0, %v2092_v3, 0.0 }
 0xe7b   :  { %2095 = vadd.xlane.f32.xlu0 %v2094_v4 }
 0xf02   :  { %v2099_v6 = vpop.xlane.xlu1 %2098 }
 0xf03   :  { %v2101_v7 = vmul.f32 0.03125, %v2099_v6 }
 0xf04   :  { %v2096_v8 = vpop.xlane.xlu0 %2095 }
 0xf05   :  { %v2103_v14 = vadd.f32 1e-05, %v2101_v7  ;;  %v2100_v9 = vmul.f32 0.03125, %v2096_v8 }
 0xf07   :  { %2463 = vrsqrt.f32 %v2103_v14  ;;  %v2102_v10 = vadd.f32 1e-05, %v2100_v9 }
 0xf09   :  { %2465 = vrsqrt.f32 %v2102_v10 }
 0xf14   :  { %v2464_v11 = vpop.eup %2463 }
 0xf15   :  { %v2107_v18 = vmul.f32 %v2464_v11, %v2091_v13 }
 0xf16   :  { %v2466_v5 = vpop.eup %2465 }
 0xf17   :  { %v2106_v2 = vmul.f32 %v2466_v5, %v2090_v63  ;;  %v2113_v20 = vmul.f32 %v2183_v17, %v2107_v18 }
 0xf19   :  { %v2112_v21 = vmul.f32 %v2183_v17, %v2106_v2  ;;  %v2119_v22 = vadd.f32 %v2184_v19, %v2113_v20 }
 0xf1b   :  { %v2118_v25 = vadd.f32 %v2184_v19, %v2112_v21  ;;  %2121 = vst.msk [vmem:[#allocation14 + $0x8] sm:$0xff] %vm134_vm0, %v2119_v22 }
 0xf1d   :  { %2120 = vst.msk [vmem:[#allocation14] sm:$0xff] %vm134_vm0, %v2118_v25 }
 0xf1e   :  { %2598 = shalt.err (!%p2595_p6)
}
 0xf1f   :  { %2133 = dma.vmem_to_hbm [thread:$0]  %s2128_s20, 256, %s3037_s12, [#allocation5], %s2619_s26, %s2619_s26, %s2620_s27  }
 0xf20   :  { %2615 = dma.done.wait [#allocation5], 256  }
 0xf21   :  { %2616 = vsyncadd [#allocation5], 4294967040 }
 0xf22   :  { %2137 = vsyncpa [#allocation4], 1 }
 0xf23   :  { %2138 = vsyncpa [#allocation7], 1 }
 0xf24   :  { %2139 = vsyncpa [#allocation10], 1 }
 0xf25   :  { %2140 = vsyncpa [#allocation13], 1 }
 0xf26   :  { %2141 = vsyncpa [#allocation5], 1 }

</bundles_post_ra>
